<compile_context>
chip_gen: v5e
topology: v5e:2x2
jax: 0.10.0
libtpu: 0.0.40
codegen_flags: <defaults>
</compile_context>

<pallas_src>
import jax
import jax.numpy as jnp
from jax.experimental import pallas as pl
from jax.experimental.pallas import tpu as pltpu

INPUT_DIM = 64      # C*H*W of the example input
HIDDEN = 1024       # fc1_size in NetMLP
OUTPUT_DIM = 16     # output_dim
OUT_PAD = 128       # lane-dense (padded) output width
BN_EPS = 1e-5
TB = 128            # batch tile (rows per grid step)


def _mlp_kernel(x_ref, w1_ref, b1_ref, w2_ref, b2_ref, out_ref):
    # fc1: bf16 x bf16 on the MXU, f32 accumulation; bias + ReLU in f32.
    h = jnp.dot(x_ref[...], w1_ref[...], preferred_element_type=jnp.float32)
    h = jnp.maximum(h + b1_ref[...], 0.0)
    # BatchNorm (eval) already folded into w2/b2 at load time; dropout = identity.
    # fc2: cast activations to bf16 for the MXU, accumulate f32, add bias in f32.
    out_ref[...] = (jnp.dot(h.astype(jnp.bfloat16), w2_ref[...],
                            preferred_element_type=jnp.float32)
                    + b2_ref[...])


def net_mlp_forward(x, fparams):
    """NetMLP.forward (eval mode). x: (B, D) or (B, C, H, W). Returns (logits, output)."""
    if isinstance(x, tuple):
        x = x[1]
    if x.ndim == 4:                       # torch: x.view(x.shape[0], -1)
        x = x.reshape(x.shape[0], -1)
    B, D = x.shape

    # Pad batch up to a multiple of TB (MXU cost is identical for M=2 or M=128;
    # full tiles keep sublanes/MXU rows busy and make the grid uniform).
    Bp = ((B + TB - 1) // TB) * TB
    xb = jnp.pad(x.astype(jnp.bfloat16), ((0, Bp - B), (0, 0)))

    w1, b1, w2f, b2f = (fparams["w1"], fparams["b1"],
                        fparams["w2_folded"], fparams["b2_folded"])

    flops = 2 * Bp * (D * HIDDEN + HIDDEN * OUT_PAD)
    bytes_accessed = (xb.size * 2 + w1.size * 2 + b1.size * 4
                      + w2f.size * 2 + b2f.size * 4 + Bp * OUT_PAD * 4)

    out = pl.pallas_call(
        _mlp_kernel,
        out_shape=jax.ShapeDtypeStruct((Bp, OUT_PAD), jnp.float32),
        grid=(Bp // TB,),
        in_specs=[
            pl.BlockSpec((TB, D), lambda i: (i, 0)),            # x tile: pipelined
            pl.BlockSpec((D, HIDDEN), lambda i: (0, 0)),        # w1: VMEM-resident
            pl.BlockSpec((1, HIDDEN), lambda i: (0, 0)),        # b1
            pl.BlockSpec((HIDDEN, OUT_PAD), lambda i: (0, 0)),  # w2' (BN folded)
            pl.BlockSpec((1, OUT_PAD), lambda i: (0, 0)),       # b2' (BN folded)
        ],
        out_specs=pl.BlockSpec((TB, OUT_PAD), lambda i: (i, 0)),
        compiler_params=pltpu.CompilerParams(
            dimension_semantics=("parallel",)),
        cost_estimate=pl.CostEstimate(flops=flops, transcendentals=0,
                                      bytes_accessed=bytes_accessed),
    )(xb, w1, b1, w2f, b2f)

    logits = out[:B, :OUTPUT_DIM]
    output = logits                        # output_activation is None
    return logits, output


def init_params(key):
    """Raw params mirroring PyTorch nn.Linear / nn.BatchNorm1d defaults."""
    k1, k2, k3, k4 = jax.random.split(key, 4)
    bound1 = 1.0 / (INPUT_DIM ** 0.5)
    bound2 = 1.0 / (HIDDEN ** 0.5)
    # torch Linear stores weight as (out, in); we store W^T = (in, out) for x @ W^T.
    w1 = jax.random.uniform(k1, (INPUT_DIM, HIDDEN), jnp.float32, -bound1, bound1)
    b1 = jax.random.uniform(k2, (1, HIDDEN), jnp.float32, -bound1, bound1)
    w2 = jax.random.uniform(k3, (HIDDEN, OUTPUT_DIM), jnp.float32, -bound2, bound2)
    b2 = jax.random.uniform(k4, (1, OUTPUT_DIM), jnp.float32, -bound2, bound2)
    return {
        "w1": w1, "b1": b1, "w2": w2, "b2": b2,
        "bn_gamma": jnp.ones((1, HIDDEN), jnp.float32),
        "bn_beta": jnp.zeros((1, HIDDEN), jnp.float32),
        "bn_mean": jnp.zeros((1, HIDDEN), jnp.float32),   # running_mean init
        "bn_var": jnp.ones((1, HIDDEN), jnp.float32),     # running_var init
    }


def prepare_params(raw):
    """One-time load-time folding: BN(eval) -> fc2, bf16 weights, lane-padded output."""
    scale = raw["bn_gamma"] * jax.lax.rsqrt(raw["bn_var"] + BN_EPS)   # (1, H)
    shift = raw["bn_beta"] - raw["bn_mean"] * scale                   # (1, H)
    w2f = raw["w2"] * scale.reshape(HIDDEN, 1)                        # diag(scale) @ w2
    b2f = raw["b2"] + shift @ raw["w2"]                               # (1, O)
    # zero-pad the 16-wide output projection to 128 lanes (lane-dense store)
    w2f = jnp.pad(w2f, ((0, 0), (0, OUT_PAD - OUTPUT_DIM)))
    b2f = jnp.pad(b2f, ((0, 0), (0, OUT_PAD - OUTPUT_DIM)))
    return {
        "w1": raw["w1"].astype(jnp.bfloat16),       # bf16 MXU path, halve weight DMA
        "b1": raw["b1"].astype(jnp.float32),        # elementwise math stays f32
        "w2_folded": w2f.astype(jnp.bfloat16),
        "b2_folded": b2f.astype(jnp.float32),
    }


if __name__ == "__main__":
    key = jax.random.PRNGKey(0)
    pkey, xkey = jax.random.split(key)
    raw_params = init_params(pkey)
    fparams = prepare_params(raw_params)

    # Example input: NCHW (B=2, C=4, H=4, W=4) -> flattened to (2, 64) inside forward
    x = jax.random.normal(xkey, (2, 4, 4, 4), jnp.float32)

    logits, output = net_mlp_forward(x, fparams)
    jax.block_until_ready(logits)
    jax.block_until_ready(output)

    xf = x.reshape(x.shape[0], -1)

    # (a) tight check vs the same folded/bf16 math in plain JAX
    h = jnp.dot(xf.astype(jnp.bfloat16), fparams["w1"],
                preferred_element_type=jnp.float32) + fparams["b1"]
    h = jnp.maximum(h, 0.0)
    ref_tight = (jnp.dot(h.astype(jnp.bfloat16), fparams["w2_folded"],
                         preferred_element_type=jnp.float32)
                 + fparams["b2_folded"])[:, :OUTPUT_DIM]
    assert jnp.allclose(logits, ref_tight, atol=2e-3, rtol=2e-3), \
        "mismatch vs folded bf16 reference"

    # (b) loose check vs the original f32 NetMLP eval-mode math (BN unfolded)
    h = jnp.maximum(xf @ raw_params["w1"] + raw_params["b1"], 0.0)
    h = ((h - raw_params["bn_mean"]) / jnp.sqrt(raw_params["bn_var"] + BN_EPS)
         * raw_params["bn_gamma"] + raw_params["bn_beta"])
    ref_f32 = h @ raw_params["w2"] + raw_params["b2"]
    assert jnp.allclose(logits, ref_f32, atol=3e-2, rtol=3e-2), \
        "mismatch vs f32 reference"

    print("KERNEL_OK")
</pallas_src>

<mosaic_0001>
module attributes {stable_mosaic.version = 11 : i64} {
  func.func @_mlp_kernel(%arg0: i32, %arg1: memref<128x64xbf16, #tpu.memory_space<vmem>>, %arg2: memref<64x1024xbf16, #tpu.memory_space<vmem>>, %arg3: memref<1x1024xf32, #tpu.memory_space<vmem>>, %arg4: memref<1024x128xbf16, #tpu.memory_space<vmem>>, %arg5: memref<1x128xf32, #tpu.memory_space<vmem>>, %arg6: memref<128x128xf32, #tpu.memory_space<vmem>>) attributes {dimension_semantics = [#tpu.dimension_semantics<parallel>], iteration_bounds = array<i64: 1>, scalar_prefetch = 0 : i64, scratch_operands = 0 : i64, tpu.core_type = #tpu.core_type<tc>, window_params = [{transform_indices = @transform_0, window_bounds = array<i64: 128, 64>}, {pipeline_mode = #tpu.pipeline_mode<synchronous>, transform_indices = @transform_1, window_bounds = array<i64: 64, 1024>}, {pipeline_mode = #tpu.pipeline_mode<synchronous>, transform_indices = @transform_2, window_bounds = array<i64: 1, 1024>}, {pipeline_mode = #tpu.pipeline_mode<synchronous>, transform_indices = @transform_3, window_bounds = array<i64: 1024, 128>}, {pipeline_mode = #tpu.pipeline_mode<synchronous>, transform_indices = @transform_4, window_bounds = array<i64: 1, 128>}, {transform_indices = @transform_5, window_bounds = array<i64: 128, 128>}]} {
    %c0 = arith.constant 0 : index
    %c0_0 = arith.constant 0 : index
    %0 = vector.load %arg1[%c0, %c0_0] : memref<128x64xbf16, #tpu.memory_space<vmem>>, vector<128x64xbf16>
    %c0_1 = arith.constant 0 : index
    %c0_2 = arith.constant 0 : index
    %1 = vector.load %arg2[%c0_1, %c0_2] : memref<64x1024xbf16, #tpu.memory_space<vmem>>, vector<64x1024xbf16>
    %cst = arith.constant dense<0.000000e+00> : vector<128x1024xf32>
    %2 = tpu.matmul %0, %1, %cst {dimension_numbers = #tpu.dot_dimension_numbers<[1], [0], [0], [1], [0, 0, 1, 1], [], []>} : vector<128x64xbf16>, vector<64x1024xbf16>, vector<128x1024xf32> -> vector<128x1024xf32>
    %c0_3 = arith.constant 0 : index
    %c0_4 = arith.constant 0 : index
    %3 = vector.load %arg3[%c0_3, %c0_4] : memref<1x1024xf32, #tpu.memory_space<vmem>>, vector<1x1024xf32>
    %4 = vector.broadcast %3 : vector<1x1024xf32> to vector<128x1024xf32>
    %5 = arith.addf %2, %4 : vector<128x1024xf32>
    %cst_5 = arith.constant 0.000000e+00 : f32
    %6 = vector.broadcast %cst_5 : f32 to vector<128x1024xf32>
    %7 = arith.maximumf %5, %6 : vector<128x1024xf32>
    %8 = arith.truncf %7 : vector<128x1024xf32> to vector<128x1024xbf16>
    %c0_6 = arith.constant 0 : index
    %c0_7 = arith.constant 0 : index
    %9 = vector.load %arg4[%c0_6, %c0_7] : memref<1024x128xbf16, #tpu.memory_space<vmem>>, vector<1024x128xbf16>
    %cst_8 = arith.constant dense<0.000000e+00> : vector<128x128xf32>
    %10 = tpu.matmul %8, %9, %cst_8 {dimension_numbers = #tpu.dot_dimension_numbers<[1], [0], [0], [1], [0, 0, 1, 1], [], []>} : vector<128x1024xbf16>, vector<1024x128xbf16>, vector<128x128xf32> -> vector<128x128xf32>
    %c0_9 = arith.constant 0 : index
    %c0_10 = arith.constant 0 : index
    %11 = vector.load %arg5[%c0_9, %c0_10] : memref<1x128xf32, #tpu.memory_space<vmem>>, vector<1x128xf32>
    %12 = vector.broadcast %11 : vector<1x128xf32> to vector<128x128xf32>
    %13 = arith.addf %10, %12 : vector<128x128xf32>
    %c0_11 = arith.constant 0 : index
    %c0_12 = arith.constant 0 : index
    %14 = vector.load %arg6[%c0_11, %c0_12] : memref<128x128xf32, #tpu.memory_space<vmem>>, vector<128x128xf32>
    tpu.vector_store %arg6[%c0_11, %c0_12], %13 {strides = array<i32>} : memref<128x128xf32, #tpu.memory_space<vmem>>, vector<128x128xf32>,
    return
  }
  func.func @transform_0(%arg0: i32) -> (i32, i32) {
    %c0_i32 = arith.constant 0 : i32
    %c0_i32_0 = arith.constant 0 : i32
    return %arg0, %c0_i32 : i32, i32
  }
  func.func @transform_1(%arg0: i32) -> (i32, i32) {
    %c0_i32 = arith.constant 0 : i32
    %c0_i32_0 = arith.constant 0 : i32
    %c0_i32_1 = arith.constant 0 : i32
    return %c0_i32, %c0_i32_0 : i32, i32
  }
  func.func @transform_2(%arg0: i32) -> (i32, i32) {
    %c0_i32 = arith.constant 0 : i32
    %c0_i32_0 = arith.constant 0 : i32
    %c0_i32_1 = arith.constant 0 : i32
    return %c0_i32, %c0_i32_0 : i32, i32
  }
  func.func @transform_3(%arg0: i32) -> (i32, i32) {
    %c0_i32 = arith.constant 0 : i32
    %c0_i32_0 = arith.constant 0 : i32
    %c0_i32_1 = arith.constant 0 : i32
    return %c0_i32, %c0_i32_0 : i32, i32
  }
  func.func @transform_4(%arg0: i32) -> (i32, i32) {
    %c0_i32 = arith.constant 0 : i32
    %c0_i32_0 = arith.constant 0 : i32
    %c0_i32_1 = arith.constant 0 : i32
    return %c0_i32, %c0_i32_0 : i32, i32
  }
  func.func @transform_5(%arg0: i32) -> (i32, i32) {
    %c0_i32 = arith.constant 0 : i32
    %c0_i32_0 = arith.constant 0 : i32
    return %arg0, %c0_i32 : i32, i32
  }
}

</mosaic_0001>

<bundles_post_ra>
// kernel: tpu_custom_call.1
= control target key start
LH: loop header
LB: loop body
LE: loop exit
PB: predicated region body
PF: predicated region fallthrough
CT: control target
= control target key end

     0   :  { %10 = vsyncpa [#allocation3], 0  ;;  %s3179_s0 = inlined_call_operand.vmem [shape: bf16[128,64], index: 0, kind: input, shape index: {}]   ;;  %s3180_s1 = inlined_call_operand.hbm [shape: bf16[64,1024], index: 1, kind: input, shape index: {}]   ;;  %s3181_s2 = inlined_call_operand.vmem [shape: f32[1,1024], index: 2, kind: input, shape index: {}]   ;;  %s3182_s3 = inlined_call_operand.hbm [shape: bf16[1024,128], index: 3, kind: input, shape index: {}]   ;;  %s3183_s4 = inlined_call_operand.vmem [shape: f32[1,128], index: 4, kind: input, shape index: {}]   ;;  %s3184_s5 = inlined_call_operand.hbm [shape: f32[128,128], index: 5, kind: output, shape index: {}]  }
   0x1   :  { %11 = vsyncpa [#allocation6], 0 }
   0x2   :  { %12 = vsyncpa [#allocation4], 0  ;;  %s19_s20 = sshll.u32 %s3180_s1, 4  ;;  %s2545_s21 = smov [#allocation2]   ;;  %s20_s20 = int_to_ptr.hbm [resolvable:$true] %s19_s20 }
   0x3   :  { %s21_s22 = sshll.u32 %s2545_s21, 4  ;;  %s34_s25 = sshll.u32 %s3182_s3, 4  ;;  %s22_s22 = int_to_ptr.vmem [resolvable:$true] %s21_s22  ;;  %s35_s25 = int_to_ptr.hbm [resolvable:$true] %s34_s25 }
   0x4   :  { %s2546_s26 = smov 512   ;;  %s2547_s27 = smov 32  }
   0x5   :  { %27 = dma.hbm_to_vmem [thread:$0]  %s20_s20, 4096, %s22_s22, [#allocation3], %s2546_s26, %s2546_s26, %s2547_s27  }
   0x6   :  { %s2548_s28 = smov [#allocation5]   ;;  %s2549_s30 = smov 64  }
   0x7   :  { %s36_s29 = sshll.u32 %s2548_s28, 4  ;;  %s2550_s6 = smov 4   ;;  %s37_s29 = int_to_ptr.vmem [resolvable:$true] %s36_s29 }
   0x8   :  { %42 = dma.hbm_to_vmem [thread:$0]  %s35_s25, 8192, %s37_s29, [#allocation6], %s2549_s30, %s2549_s30, %s2550_s6  }
   0x9   :  { %2539 = dma.done.wait [#allocation3], 4096  }
   0xa   :  { %2540 = vsyncadd [#allocation3], 4294963200 }
   0xb   :  { %2541 = dma.done.wait [#allocation6], 8192  }
   0xc   :  { %2542 = vsyncadd [#allocation6], 4294959104  ;;  %v2003_v0 = vld [vmem:[#allocation2 + $0xc0] sm:$0xf]  ;;  %v2385_v2 = vld [vmem:[#allocation2 + $0xc4] sm:$0xf] }
   0xd   :  { %v2389_v1 = vld [vmem:[#allocation2 + $0xdc] sm:$0xf0]  ;;  %v2005_v4 = vld [vmem:[#allocation2 + $0xe0] sm:$0xf0]  ;;  %v2011_v5 = vld [vmem:[#allocation2 + $0xc8] sm:$0xf] }
   0xe   :  { %v2004_v3 = vor.u32 %v2389_v1, %v2003_v0  ;;  %v2390_v6 = vld [vmem:[#allocation2 + $0xe4] sm:$0xf0]  ;;  %v2008_v7 = vor.u32 %v2385_v2, %v2005_v4  ;;  %v2386_v9 = vld [vmem:[#allocation2 + $0xcc] sm:$0xf]  ;;  %v1971_v11 = vld [vmem:[#allocation2 + $0x80] sm:$0xf] }
   0xf   :  { %v2012_v8 = vor.u32 %v2390_v6, %v2011_v5  ;;  %v2013_v10 = vld [vmem:[#allocation2 + $0xe8] sm:$0xf0]  ;;  %v2381_v13 = vld [vmem:[#allocation2 + $0x9c] sm:$0xf0]  ;;  %v2377_v14 = vld [vmem:[#allocation2 + $0x84] sm:$0xf] }
  0x10   :  { %349 = vmatpush.bf16.msra.mxu0 %v2004_v3  ;;  %v2016_v12 = vor.u32 %v2386_v9, %v2013_v10  ;;  %v1973_v15 = vld [vmem:[#allocation2 + $0xa0] sm:$0xf0]  ;;  %398 = vmatpush.bf16.msra.mxu1 %v2008_v7  ;;  %v1972_v16 = vor.u32 %v2381_v13, %v1971_v11  ;;  %v1979_v18 = vld [vmem:[#allocation2 + $0x88] sm:$0xf]  ;;  %v2378_v20 = vld [vmem:[#allocation2 + $0x8c] sm:$0xf] }
  0x11   :  { %447 = vmatpush.bf16.msra.mxu2 %v2012_v8  ;;  %v1976_v17 = vor.u32 %v2377_v14, %v1973_v15  ;;  %v2382_v19 = vld [vmem:[#allocation2 + $0xa4] sm:$0xf0]  ;;  %v1981_v22 = vld [vmem:[#allocation2 + $0xa8] sm:$0xf0]  ;;  %v1939_v23 = vld [vmem:[#allocation2 + $0x40] sm:$0xf] }
  0x12   :  { %496 = vmatpush.bf16.msra.mxu3 %v2016_v12  ;;  %v1980_v21 = vor.u32 %v2382_v19, %v1979_v18  ;;  %v2373_v24 = vld [vmem:[#allocation2 + $0x5c] sm:$0xf0]  ;;  %v1984_v25 = vor.u32 %v2378_v20, %v1981_v22  ;;  %v2369_v26 = vld [vmem:[#allocation2 + $0x44] sm:$0xf]  ;;  %v1947_v28 = vld [vmem:[#allocation2 + $0x48] sm:$0xf] }
  0x13   :  { %v1941_v27 = vld [vmem:[#allocation2 + $0x60] sm:$0xf0]  ;;  %v1940_v29 = vor.u32 %v2373_v24, %v1939_v23  ;;  %v2374_v30 = vld [vmem:[#allocation2 + $0x64] sm:$0xf0]  ;;  %v2370_v31 = vld [vmem:[#allocation2 + $0x4c] sm:$0xf] }
  0x14   :  { %350 = vmatpush.bf16.msra.mxu0 %v1972_v16  ;;  %v1949_v32 = vld [vmem:[#allocation2 + $0x68] sm:$0xf0]  ;;  %399 = vmatpush.bf16.msra.mxu1 %v1976_v17  ;;  %v1944_v33 = vor.u32 %v2369_v26, %v1941_v27  ;;  %v1948_v34 = vor.u32 %v2374_v30, %v1947_v28  ;;  %v1907_v35 = vld [vmem:[#allocation2] sm:$0xf]  ;;  %v2361_v37 = vld [vmem:[#allocation2 + $0x4] sm:$0xf] }
  0x15   :  { %448 = vmatpush.bf16.msra.mxu2 %v1980_v21  ;;  %v2365_v36 = vld [vmem:[#allocation2 + $0x1c] sm:$0xf0]  ;;  %v1952_v38 = vor.u32 %v2370_v31, %v1949_v32  ;;  %v1909_v39 = vld [vmem:[#allocation2 + $0x20] sm:$0xf0]  ;;  %v1915_v40 = vld [vmem:[#allocation2 + $0x8] sm:$0xf] }
  0x16   :  { %497 = vmatpush.bf16.msra.mxu3 %v1984_v25  ;;  %v2366_v41 = vld [vmem:[#allocation2 + $0x24] sm:$0xf0]  ;;  %v2362_v42 = vld [vmem:[#allocation2 + $0xc] sm:$0xf]  ;;  %v1908_v44 = vor.u32 %v2365_v36, %v1907_v35  ;;  %v2027_v45 = vld [vmem:[#allocation2 + $0xd8] sm:$0xf]  ;;  %v1912_v47 = vor.u32 %v2361_v37, %v1909_v39 }
  0x17   :  { %v1917_v43 = vld [vmem:[#allocation2 + $0x28] sm:$0xf0]  ;;  %v2392_v46 = vld [vmem:[#allocation2 + $0xf4] sm:$0xf0]  ;;  %v1916_v48 = vor.u32 %v2366_v41, %v1915_v40  ;;  %v2388_v49 = vld [vmem:[#allocation2 + $0xdc] sm:$0xf] }
  0x18   :  { %351 = vmatpush.bf16.msra.mxu0 %v1940_v29  ;;  %400 = vmatpush.bf16.msra.mxu1 %v1944_v33  ;;  %v2029_v50 = vld [vmem:[#allocation2 + $0xf8] sm:$0xf0]  ;;  %v1920_v51 = vor.u32 %v2362_v42, %v1917_v43  ;;  %v2593_v52 = vld [vmem:[%s3179_s0] sm:$0xff]  ;;  %v2028_v53 = vor.u32 %v2392_v46, %v2027_v45  ;;  %v2019_v54 = vld [vmem:[#allocation2 + $0xd0] sm:$0xf]  ;;  %vm320_vm0 = vcmask 523264  }
  0x19   :  { %449 = vmatpush.bf16.msra.mxu2 %v1948_v34  ;;  %v2391_v55 = vld [vmem:[#allocation2 + $0xec] sm:$0xf0]  ;;  %v2032_v56 = vor.u32 %v2388_v49, %v2029_v50  ;;  %v2387_v57 = vld [vmem:[#allocation2 + $0xd4] sm:$0xf]  ;;  %v1995_v61 = vld [vmem:[#allocation2 + $0x98] sm:$0xf] }
  0x1a   :  { %498 = vmatpush.bf16.msra.mxu3 %v1952_v38  ;;  %v2021_v58 = vld [vmem:[#allocation2 + $0xf0] sm:$0xf0]  ;;  %v2020_v59 = vor.u32 %v2391_v55, %v2019_v54  ;;  %v2384_v62 = vld [vmem:[#allocation2 + $0xb4] sm:$0xf0]  ;;  %v1987_v63 = vld [vmem:[#allocation2 + $0x90] sm:$0xf] }
  0x1b   :  { %v2024_v60 = vor.u32 %v2387_v57, %v2021_v58  ;;  %v1996_v0 = vor.u32 %v2384_v62, %v1995_v61  ;;  %v2383_v1 = vld [vmem:[#allocation2 + $0xac] sm:$0xf0]  ;;  %v2380_v2 = vld [vmem:[#allocation2 + $0x9c] sm:$0xf]  ;;  %v2379_v6 = vld [vmem:[#allocation2 + $0x94] sm:$0xf] }
  0x1c   :  { %352 = vmatpush.bf16.msra.mxu0 %v1908_v44  ;;  %401 = vmatpush.bf16.msra.mxu1 %v1912_v47  ;;  %v1997_v3 = vld [vmem:[#allocation2 + $0xb8] sm:$0xf0]  ;;  %v1988_v4 = vor.u32 %v2383_v1, %v1987_v63  ;;  %v1989_v7 = vld [vmem:[#allocation2 + $0xb0] sm:$0xf0]  ;;  %v2606_v9 = vld [vmem:[%s3179_s0 + $0x8] sm:$0xff]  ;;  %s1859_s26 = sshll.u32 %s3184_s5, 4  ;;  %s1860_s26 = int_to_ptr.hbm [resolvable:$true] %s1859_s26 }
  0x1d   :  { %450 = vmatpush.bf16.msra.mxu2 %v1916_v48  ;;  %v2000_v5 = vor.u32 %v2380_v2, %v1997_v3  ;;  %v1992_v8 = vor.u32 %v2379_v6, %v1989_v7  ;;  %v2619_v10 = vld [vmem:[%s3179_s0 + $0x10] sm:$0xff]  ;;  %v1963_v11 = vld [vmem:[#allocation2 + $0x58] sm:$0xf]  ;;  %v2372_v16 = vld [vmem:[#allocation2 + $0x5c] sm:$0xf]  ;;  %s2552_s27 = smov 128  }
  0x1e   :  { %499 = vmatpush.bf16.msra.mxu3 %v1920_v51  ;;  %v2376_v12 = vld [vmem:[#allocation2 + $0x74] sm:$0xf0]  ;;  %v1955_v13 = vld [vmem:[#allocation2 + $0x50] sm:$0xf]  ;;  %v1965_v17 = vld [vmem:[#allocation2 + $0x78] sm:$0xf0] }
  0x1f   :  { %2033 = vmatmul.msk.bf16.vlgmr.msra.gmra.mxu0 %vm320_vm0, %v2593_v52  ;;  %2041 = vmatmul.msk.bf16.vlgmr.msra.gmra.mxu1 %vm320_vm0, %v2593_v52  ;;  %v1964_v14 = vor.u32 %v2376_v12, %v1963_v11  ;;  %v2375_v15 = vld [vmem:[#allocation2 + $0x6c] sm:$0xf0]  ;;  %v1968_v19 = vor.u32 %v2372_v16, %v1965_v17  ;;  %v2371_v20 = vld [vmem:[#allocation2 + $0x54] sm:$0xf]  ;;  %v2632_v23 = vld [vmem:[%s3179_s0 + $0x18] sm:$0xff]  ;;  %s2553_s28 = smov 8  }
  0x20   :  { %2049 = vmatmul.msk.bf16.vlgmr.msra.gmra.mxu2 %vm320_vm0, %v2593_v52  ;;  %545 = vmatpush.bf16.msrb.mxu0 %v2020_v59  ;;  %v1956_v18 = vor.u32 %v2375_v15, %v1955_v13  ;;  %v1957_v21 = vld [vmem:[#allocation2 + $0x70] sm:$0xf0]  ;;  %v2645_v24 = vld [vmem:[%s3179_s0 + $0x20] sm:$0xff]  ;;  %v1931_v25 = vld [vmem:[#allocation2 + $0x18] sm:$0xf] }
  0x21   :  { %643 = vmatpush.bf16.msrb.mxu2 %v2028_v53  ;;  %2057 = vmatmul.msk.bf16.vlgmr.msra.gmra.mxu3 %vm320_vm0, %v2593_v52  ;;  %v1960_v22 = vor.u32 %v2371_v20, %v1957_v21  ;;  %v2368_v26 = vld [vmem:[#allocation2 + $0x34] sm:$0xf0]  ;;  %v1923_v27 = vld [vmem:[#allocation2 + $0x10] sm:$0xf]  ;;  %v2364_v30 = vld [vmem:[#allocation2 + $0x1c] sm:$0xf] }
  0x22   :  { %692 = vmatpush.bf16.msrb.mxu3 %v2032_v56  ;;  %594 = vmatpush.bf16.msrb.mxu1 %v2024_v60  ;;  %v1932_v28 = vor.u32 %v2368_v26, %v1931_v25  ;;  %v2367_v29 = vld [vmem:[#allocation2 + $0x2c] sm:$0xf0]  ;;  %v1933_v31 = vld [vmem:[#allocation2 + $0x38] sm:$0xf0]  ;;  %v2363_v34 = vld [vmem:[#allocation2 + $0x14] sm:$0xf] }
  0x23   :  { %v1924_v32 = vor.u32 %v2367_v29, %v1923_v27  ;;  %v1936_v33 = vor.u32 %v2364_v30, %v1933_v31  ;;  %v1925_v35 = vld [vmem:[#allocation2 + $0x30] sm:$0xf0]  ;;  %v2658_v37 = vld [vmem:[%s3179_s0 + $0x28] sm:$0xff]  ;;  %v2416_v39 = vld [vmem:[#allocation5 + $0xb8] sm:$0xff] }
  0x24   :  { %546 = vmatpush.bf16.msrb.mxu0 %v1988_v4  ;;  %v1928_v36 = vor.u32 %v2363_v34, %v1925_v35  ;;  %v2671_v38 = vld [vmem:[%s3179_s0 + $0x30] sm:$0xff]  ;;  %v2400_v40 = vld [vmem:[#allocation5 + $0x38] sm:$0xff]  ;;  %v2697_v48 = vld [vmem:[%s3181_s2] sm:$0xff] }
  0x25   :  { %644 = vmatpush.bf16.msrb.mxu2 %v1996_v0  ;;  %v2424_v41 = vld [vmem:[#allocation5 + $0xf8] sm:$0xff]  ;;  %v2415_v44 = vld [vmem:[#allocation5 + $0xb0] sm:$0xff]  ;;  %v2700_v51 = vperm.slane %v2697_v48, 0  ;;  %v2705_v53 = vperm.slane %v2697_v48, 1  ;;  %v2414_v54 = vld [vmem:[#allocation5 + $0xa8] sm:$0xff]  ;;  %v2717_v0 = vperm.slane %v2697_v48, 2 }
  0x26   :  { %693 = vmatpush.bf16.msrb.mxu3 %v2000_v5  ;;  %595 = vmatpush.bf16.msrb.mxu1 %v1992_v8  ;;  %v2408_v42 = vld [vmem:[#allocation5 + $0x78] sm:$0xff]  ;;  %v2399_v45 = vld [vmem:[#allocation5 + $0x30] sm:$0xff]  ;;  %v2398_v55 = vld [vmem:[#allocation5 + $0x28] sm:$0xff]  ;;  %v2721_v2 = vperm.slane %v2697_v48, 3 }
  0x27   :  { %v2684_v43 = vld [vmem:[%s3179_s0 + $0x38] sm:$0xff]  ;;  %v2423_v46 = vld [vmem:[#allocation5 + $0xf0] sm:$0xff]  ;;  %v2422_v56 = vld [vmem:[#allocation5 + $0xe8] sm:$0xff] }
  0x28   :  { %547 = vmatpush.bf16.msrb.mxu0 %v1956_v18  ;;  %v2407_v47 = vld [vmem:[#allocation5 + $0x70] sm:$0xff]  ;;  %v2406_v4 = vld [vmem:[#allocation5 + $0x68] sm:$0xff]  ;;  %v2413_v27 = vld [vmem:[#allocation5 + $0xa0] sm:$0xff] }
  0x29   :  { %645 = vmatpush.bf16.msrb.mxu2 %v1964_v14  ;;  %v2421_v29 = vld [vmem:[#allocation5 + $0xe0] sm:$0xff] }
  0x2a   :  { %694 = vmatpush.bf16.msrb.mxu3 %v1968_v19  ;;  %596 = vmatpush.bf16.msrb.mxu1 %v1960_v22 }
  0x2c   :  { %548 = vmatpush.bf16.msrb.mxu0 %v1924_v32 }
  0x2d   :  { %646 = vmatpush.bf16.msrb.mxu2 %v1932_v28  ;;  %v2397_v28 = vld [vmem:[#allocation5 + $0x20] sm:$0xff] }
  0x2e   :  { %695 = vmatpush.bf16.msrb.mxu3 %v1936_v33  ;;  %597 = vmatpush.bf16.msrb.mxu1 %v1928_v36 }
  0x2f   :  { %2034 = vmatmul.msk.bf16.gmra.mxu0 %vm320_vm0, %v2606_v9  ;;  %2042 = vmatmul.msk.bf16.gmra.mxu1 %vm320_vm0, %v2606_v9 }
  0x30   :  { %2050 = vmatmul.msk.bf16.gmra.mxu2 %vm320_vm0, %v2606_v9  ;;  %1445 = vmatpush.bf16.msra.mxu0 %v2400_v40 }
  0x31   :  { %2058 = vmatmul.msk.bf16.gmra.mxu3 %vm320_vm0, %v2606_v9  ;;  %1543 = vmatpush.bf16.msra.mxu2 %v2416_v39 }
  0x32   :  { %1592 = vmatpush.bf16.msra.mxu3 %v2424_v41  ;;  %1494 = vmatpush.bf16.msra.mxu1 %v2408_v42  ;;  %v2405_v41 = vld [vmem:[#allocation5 + $0x60] sm:$0xff] }
  0x34   :  { %1446 = vmatpush.bf16.msra.mxu0 %v2399_v45 }
  0x35   :  { %1544 = vmatpush.bf16.msra.mxu2 %v2415_v44 }
  0x36   :  { %1593 = vmatpush.bf16.msra.mxu3 %v2423_v46  ;;  %1495 = vmatpush.bf16.msra.mxu1 %v2407_v47 }
  0x38   :  { %1447 = vmatpush.bf16.msra.mxu0 %v2398_v55 }
  0x39   :  { %1545 = vmatpush.bf16.msra.mxu2 %v2414_v54 }
  0x3a   :  { %1594 = vmatpush.bf16.msra.mxu3 %v2422_v56  ;;  %1496 = vmatpush.bf16.msra.mxu1 %v2406_v4 }
  0x3c   :  { %1448 = vmatpush.bf16.msra.mxu0 %v2397_v28 }
  0x3d   :  { %1546 = vmatpush.bf16.msra.mxu2 %v2413_v27 }
  0x3e   :  { %1595 = vmatpush.bf16.msra.mxu3 %v2421_v29  ;;  %1497 = vmatpush.bf16.msra.mxu1 %v2405_v41  ;;  %v2411_v41 = vld [vmem:[#allocation5 + $0x90] sm:$0xff] }
  0x3f   :  { %2035 = vmatmul.msk.bf16.gmra.mxu0 %vm320_vm0, %v2619_v10  ;;  %2043 = vmatmul.msk.bf16.gmra.mxu1 %vm320_vm0, %v2619_v10 }
  0x40   :  { %2051 = vmatmul.msk.bf16.gmra.mxu2 %vm320_vm0, %v2619_v10 }
  0x41   :  { %2059 = vmatmul.msk.bf16.gmra.mxu3 %vm320_vm0, %v2619_v10 }
  0x4f   :  { %2036 = vmatmul.msk.bf16.gmra.mxu0 %vm320_vm0, %v2632_v23  ;;  %2044 = vmatmul.msk.bf16.gmra.mxu1 %vm320_vm0, %v2632_v23 }
  0x50   :  { %2052 = vmatmul.msk.bf16.gmra.mxu2 %vm320_vm0, %v2632_v23 }
  0x51   :  { %2060 = vmatmul.msk.bf16.gmra.mxu3 %vm320_vm0, %v2632_v23 }
  0x5f   :  { %2037 = vmatmul.msk.bf16.gmra.mxu0 %vm320_vm0, %v2645_v24  ;;  %2045 = vmatmul.msk.bf16.gmra.mxu1 %vm320_vm0, %v2645_v24 }
  0x60   :  { %2053 = vmatmul.msk.bf16.gmra.mxu2 %vm320_vm0, %v2645_v24 }
  0x61   :  { %2061 = vmatmul.msk.bf16.gmra.mxu3 %vm320_vm0, %v2645_v24 }
  0x6f   :  { %2038 = vmatmul.msk.bf16.gmra.mxu0 %vm320_vm0, %v2658_v37  ;;  %2046 = vmatmul.msk.bf16.gmra.mxu1 %vm320_vm0, %v2658_v37 }
  0x70   :  { %2054 = vmatmul.msk.bf16.gmra.mxu2 %vm320_vm0, %v2658_v37 }
  0x71   :  { %2062 = vmatmul.msk.bf16.gmra.mxu3 %vm320_vm0, %v2658_v37 }
  0x7f   :  { %2039 = vmatmul.msk.bf16.gmra.mxu0 %vm320_vm0, %v2671_v38  ;;  %2047 = vmatmul.msk.bf16.gmra.mxu1 %vm320_vm0, %v2671_v38 }
  0x80   :  { %2055 = vmatmul.msk.bf16.gmra.mxu2 %vm320_vm0, %v2671_v38 }
  0x81   :  { %2063 = vmatmul.msk.bf16.gmra.mxu3 %vm320_vm0, %v2671_v38 }
  0x8f   :  { %2040 = vmatmul.msk.bf16.gmra.mxu0 %vm320_vm0, %v2684_v43  ;;  %2048 = vmatmul.msk.bf16.gmra.mxu1 %vm320_vm0, %v2684_v43 }
  0x90   :  { %2056 = vmatmul.msk.bf16.gmra.mxu2 %vm320_vm0, %v2684_v43 }
  0x91   :  { %2064 = vmatmul.msk.bf16.gmra.mxu3 %vm320_vm0, %v2684_v43 }
  0x9c   :  { %v354_v49 = vpop.f32.mrf.mxu0  ;;  %v403_v50 = vpop.f32.mrf.mxu1 }
  0x9d   :  { %v355_v57 = vadd.f32 %v354_v49, %v2700_v51  ;;  %v404_v59 = vadd.f32 %v403_v50, %v2705_v53 }
  0x9f   :  { %2065 = vmatmul.msk.bf16.vlgmr.msrb.gmra.mxu0 %vm320_vm0, %v2593_v52  ;;  %2073 = vmatmul.msk.bf16.vlgmr.msrb.gmra.mxu1 %vm320_vm0, %v2593_v52  ;;  %v737_v1 = vmax.f32 %v355_v57, 0.0  ;;  %v738_v5 = vmax.f32 %v404_v59, 0.0 }
  0xa0   :  { %2081 = vmatmul.msk.bf16.vlgmr.msrb.gmra.mxu2 %vm320_vm0, %v2593_v52 }
  0xa1   :  { %2089 = vmatmul.msk.bf16.vlgmr.msrb.gmra.mxu3 %vm320_vm0, %v2593_v52 }
  0xa3   :  { %v452_v58 = vpop.f32.mrf.mxu2 }
  0xa4   :  { %v501_v60 = vpop.f32.mrf.mxu3  ;;  %v356_v61 = vpop.f32.mrf.mxu0  ;;  %v453_v8 = vadd.f32 %v452_v58, %v2717_v0 }
  0xa5   :  { %v357_v62 = vadd.f32 %v356_v61, %v2700_v51  ;;  %v405_v63 = vpop.f32.mrf.mxu1  ;;  %v502_v12 = vadd.f32 %v501_v60, %v2721_v2 }
  0xa6   :  { %v406_v52 = vadd.f32 %v405_v63, %v2705_v53  ;;  %v739_v19 = vmax.f32 %v453_v8, 0.0 }
  0xa7   :  { %v745_v3 = vmax.f32 %v357_v62, 0.0  ;;  %v740_v21 = vmax.f32 %v502_v12, 0.0 }
  0xa8   :  { %v746_v6 = vmax.f32 %v406_v52, 0.0  ;;  %v2412_v52 = vld [vmem:[#allocation5 + $0x98] sm:$0xff] }
  0xa9   :  { %v2723_v7 = vpack.c.bf16 %v745_v3, %v737_v1  ;;  %v2396_v1 = vld [vmem:[#allocation5 + $0x18] sm:$0xff]  ;;  %1547 = vmatpush.bf16.msra.mxu2 %v2412_v52 }
  0xaa   :  { %v2726_v11 = vpack.c.bf16 %v746_v6, %v738_v5  ;;  %v2420_v3 = vld [vmem:[#allocation5 + $0xd8] sm:$0xff]  ;;  %1449 = vmatpush.bf16.msra.mxu0 %v2396_v1 }
  0xab   :  { %v454_v13 = vpop.f32.mrf.mxu2  ;;  %1596 = vmatpush.bf16.msra.mxu3 %v2420_v3 }
  0xac   :  { %v455_v14 = vadd.f32 %v454_v13, %v2717_v0  ;;  %v503_v15 = vpop.f32.mrf.mxu3  ;;  %v359_v16 = vpop.f32.mrf.mxu0 }
  0xad   :  { %v504_v17 = vadd.f32 %v503_v15, %v2721_v2  ;;  %v408_v18 = vpop.f32.mrf.mxu1  ;;  %v360_v30 = vadd.f32 %v359_v16, %v2700_v51  ;;  %1548 = vmatpush.bf16.msra.mxu2 %v2411_v41 }
  0xae   :  { %v747_v20 = vmax.f32 %v455_v14, 0.0  ;;  %v409_v32 = vadd.f32 %v408_v18, %v2705_v53  ;;  %v2404_v18 = vld [vmem:[#allocation5 + $0x58] sm:$0xff] }
  0xaf   :  { %v748_v22 = vmax.f32 %v504_v17, 0.0  ;;  %2066 = vmatmul.msk.bf16.gmra.mxu0 %vm320_vm0, %v2606_v9  ;;  %2074 = vmatmul.msk.bf16.gmra.mxu1 %vm320_vm0, %v2606_v9  ;;  %v753_v40 = vmax.f32 %v360_v30, 0.0 }
  0xb0   :  { %v2733_v25 = vpack.c.bf16 %v747_v20, %v739_v19  ;;  %2082 = vmatmul.msk.bf16.gmra.mxu2 %vm320_vm0, %v2606_v9  ;;  %v754_v42 = vmax.f32 %v409_v32, 0.0  ;;  %1498 = vmatpush.bf16.msra.mxu1 %v2404_v18 }
  0xb1   :  { %v2739_v26 = vpack.c.bf16 %v748_v22, %v740_v21  ;;  %2090 = vmatmul.msk.bf16.gmra.mxu3 %vm320_vm0, %v2606_v9 }
  0xb3   :  { %v457_v31 = vpop.f32.mrf.mxu2 }
  0xb4   :  { %v506_v33 = vpop.f32.mrf.mxu3  ;;  %v361_v34 = vpop.f32.mrf.mxu0  ;;  %v458_v46 = vadd.f32 %v457_v31, %v2717_v0 }
  0xb5   :  { %v362_v35 = vadd.f32 %v361_v34, %v2700_v51  ;;  %v410_v36 = vpop.f32.mrf.mxu1  ;;  %v507_v49 = vadd.f32 %v506_v33, %v2721_v2 }
  0xb6   :  { %v411_v39 = vadd.f32 %v410_v36, %v2705_v53  ;;  %v755_v59 = vmax.f32 %v458_v46, 0.0 }
  0xb7   :  { %v761_v9 = vmax.f32 %v362_v35, 0.0  ;;  %v756_v61 = vmax.f32 %v507_v49, 0.0 }
  0xb8   :  { %v762_v44 = vmax.f32 %v411_v39, 0.0 }
  0xb9   :  { %v2747_v45 = vpack.c.bf16 %v761_v9, %v753_v40 }
  0xba   :  { %v2750_v47 = vpack.c.bf16 %v762_v44, %v754_v42  ;;  %v2395_v42 = vld [vmem:[#allocation5 + $0x10] sm:$0xff] }
  0xbb   :  { %v459_v50 = vpop.f32.mrf.mxu2  ;;  %v2419_v44 = vld [vmem:[#allocation5 + $0xd0] sm:$0xff]  ;;  %1450 = vmatpush.bf16.msra.mxu0 %v2395_v42  ;;  %v2402_v42 = vld [vmem:[#allocation5 + $0x48] sm:$0xff] }
  0xbc   :  { %v460_v54 = vadd.f32 %v459_v50, %v2717_v0  ;;  %v508_v55 = vpop.f32.mrf.mxu3  ;;  %v364_v56 = vpop.f32.mrf.mxu0  ;;  %1597 = vmatpush.bf16.msra.mxu3 %v2419_v44 }
  0xbd   :  { %v509_v57 = vadd.f32 %v508_v55, %v2721_v2  ;;  %v413_v58 = vpop.f32.mrf.mxu1  ;;  %v365_v5 = vadd.f32 %v364_v56, %v2700_v51 }
  0xbe   :  { %v763_v60 = vmax.f32 %v460_v54, 0.0  ;;  %v414_v8 = vadd.f32 %v413_v58, %v2705_v53 }
  0xbf   :  { %v764_v62 = vmax.f32 %v509_v57, 0.0  ;;  %2067 = vmatmul.msk.bf16.gmra.mxu0 %vm320_vm0, %v2619_v10  ;;  %2075 = vmatmul.msk.bf16.gmra.mxu1 %vm320_vm0, %v2619_v10  ;;  %v769_v16 = vmax.f32 %v365_v5, 0.0 }
  0xc0   :  { %2083 = vmatmul.msk.bf16.gmra.mxu2 %vm320_vm0, %v2619_v10  ;;  %v2761_v63 = vpack.c.bf16 %v763_v60, %v755_v59  ;;  %v770_v19 = vmax.f32 %v414_v8, 0.0 }
  0xc1   :  { %2091 = vmatmul.msk.bf16.gmra.mxu3 %vm320_vm0, %v2619_v10  ;;  %v2765_v4 = vpack.c.bf16 %v764_v62, %v756_v61  ;;  %v2403_v61 = vld [vmem:[#allocation5 + $0x50] sm:$0xff] }
  0xc2   :  { %1499 = vmatpush.bf16.msra.mxu1 %v2403_v61 }
  0xc3   :  { %v462_v6 = vpop.f32.mrf.mxu2 }
  0xc4   :  { %v511_v12 = vpop.f32.mrf.mxu3  ;;  %v366_v13 = vpop.f32.mrf.mxu0  ;;  %v463_v22 = vadd.f32 %v462_v6, %v2717_v0 }
  0xc5   :  { %v367_v14 = vadd.f32 %v366_v13, %v2700_v51  ;;  %v415_v15 = vpop.f32.mrf.mxu1  ;;  %v512_v28 = vadd.f32 %v511_v12, %v2721_v2 }
  0xc6   :  { %v416_v10 = vadd.f32 %v415_v15, %v2705_v53  ;;  %v771_v35 = vmax.f32 %v463_v22, 0.0  ;;  %v2410_v22 = vld [vmem:[#allocation5 + $0x88] sm:$0xff]  ;;  %1500 = vmatpush.bf16.msra.mxu1 %v2402_v42 }
  0xc7   :  { %v777_v17 = vmax.f32 %v367_v14, 0.0  ;;  %v772_v39 = vmax.f32 %v512_v28, 0.0  ;;  %v2394_v28 = vld [vmem:[#allocation5 + $0x8] sm:$0xff]  ;;  %1549 = vmatpush.bf16.msra.mxu2 %v2410_v22 }
  0xc8   :  { %v778_v20 = vmax.f32 %v416_v10, 0.0  ;;  %1451 = vmatpush.bf16.msra.mxu0 %v2394_v28 }
  0xc9   :  { %v2771_v21 = vpack.c.bf16 %v777_v17, %v769_v16 }
  0xca   :  { %v2774_v27 = vpack.c.bf16 %v778_v20, %v770_v19 }
  0xcb   :  { %v464_v29 = vpop.f32.mrf.mxu2 }
  0xcc   :  { %v465_v30 = vadd.f32 %v464_v29, %v2717_v0  ;;  %v513_v31 = vpop.f32.mrf.mxu3  ;;  %v369_v32 = vpop.f32.mrf.mxu0  ;;  %v2418_v29 = vld [vmem:[#allocation5 + $0xc8] sm:$0xff] }
  0xcd   :  { %v514_v33 = vadd.f32 %v513_v31, %v2721_v2  ;;  %v418_v34 = vpop.f32.mrf.mxu1  ;;  %v370_v49 = vadd.f32 %v369_v32, %v2700_v51  ;;  %1598 = vmatpush.bf16.msra.mxu3 %v2418_v29 }
  0xce   :  { %v779_v36 = vmax.f32 %v465_v30, 0.0  ;;  %v419_v54 = vadd.f32 %v418_v34, %v2705_v53 }
  0xcf   :  { %v780_v40 = vmax.f32 %v514_v33, 0.0  ;;  %2068 = vmatmul.msk.bf16.gmra.mxu0 %vm320_vm0, %v2632_v23  ;;  %2076 = vmatmul.msk.bf16.gmra.mxu1 %vm320_vm0, %v2632_v23  ;;  %v785_v59 = vmax.f32 %v370_v49, 0.0 }
  0xd0   :  { %2084 = vmatmul.msk.bf16.gmra.mxu2 %vm320_vm0, %v2632_v23  ;;  %v2785_v9 = vpack.c.bf16 %v779_v36, %v771_v35  ;;  %v786_v62 = vmax.f32 %v419_v54, 0.0 }
  0xd1   :  { %2092 = vmatmul.msk.bf16.gmra.mxu3 %vm320_vm0, %v2632_v23  ;;  %v2789_v46 = vpack.c.bf16 %v780_v40, %v772_v39 }
  0xd3   :  { %v467_v50 = vpop.f32.mrf.mxu2 }
  0xd4   :  { %v516_v55 = vpop.f32.mrf.mxu3  ;;  %v371_v56 = vpop.f32.mrf.mxu0  ;;  %v468_v3 = vadd.f32 %v467_v50, %v2717_v0 }
  0xd5   :  { %v372_v57 = vadd.f32 %v371_v56, %v2700_v51  ;;  %v420_v58 = vpop.f32.mrf.mxu1  ;;  %v517_v6 = vadd.f32 %v516_v55, %v2721_v2 }
  0xd6   :  { %v421_v23 = vadd.f32 %v420_v58, %v2705_v53  ;;  %v787_v16 = vmax.f32 %v468_v3, 0.0 }
  0xd7   :  { %v793_v60 = vmax.f32 %v372_v57, 0.0  ;;  %v788_v18 = vmax.f32 %v517_v6, 0.0 }
  0xd8   :  { %v794_v52 = vmax.f32 %v421_v23, 0.0 }
  0xd9   :  { %v2795_v1 = vpack.c.bf16 %v793_v60, %v785_v59 }
  0xda   :  { %v2798_v5 = vpack.c.bf16 %v794_v52, %v786_v62 }
  0xdb   :  { %v469_v8 = vpop.f32.mrf.mxu2 }
  0xdc   :  { %v470_v12 = vadd.f32 %v469_v8, %v2717_v0  ;;  %v518_v13 = vpop.f32.mrf.mxu3  ;;  %v374_v14 = vpop.f32.mrf.mxu0 }
  0xdd   :  { %v519_v15 = vadd.f32 %v518_v13, %v2721_v2  ;;  %v423_v10 = vpop.f32.mrf.mxu1  ;;  %v375_v31 = vadd.f32 %v374_v14, %v2700_v51  ;;  %v2393_v13 = vld [vmem:[#allocation5] sm:$0xff] }
  0xde   :  { %v795_v17 = vmax.f32 %v470_v12, 0.0  ;;  %v424_v33 = vadd.f32 %v423_v10, %v2705_v53  ;;  %v2409_v12 = vld [vmem:[#allocation5 + $0x80] sm:$0xff]  ;;  %1452 = vmatpush.bf16.msra.mxu0 %v2393_v13 }
  0xdf   :  { %v796_v19 = vmax.f32 %v519_v15, 0.0  ;;  %2069 = vmatmul.msk.bf16.gmra.mxu0 %vm320_vm0, %v2645_v24  ;;  %2077 = vmatmul.msk.bf16.gmra.mxu1 %vm320_vm0, %v2645_v24  ;;  %v801_v40 = vmax.f32 %v375_v31, 0.0  ;;  %v2417_v14 = vld [vmem:[#allocation5 + $0xc0] sm:$0xff] }
  0xe0   :  { %2085 = vmatmul.msk.bf16.gmra.mxu2 %vm320_vm0, %v2645_v24  ;;  %v2809_v20 = vpack.c.bf16 %v795_v17, %v787_v16  ;;  %v802_v44 = vmax.f32 %v424_v33, 0.0  ;;  %1599 = vmatpush.bf16.msra.mxu3 %v2417_v14 }
  0xe1   :  { %2093 = vmatmul.msk.bf16.gmra.mxu3 %vm320_vm0, %v2645_v24  ;;  %v2813_v30 = vpack.c.bf16 %v796_v19, %v788_v18  ;;  %1550 = vmatpush.bf16.msra.mxu2 %v2409_v12 }
  0xe3   :  { %v472_v32 = vpop.f32.mrf.mxu2 }
  0xe4   :  { %v521_v34 = vpop.f32.mrf.mxu3  ;;  %v376_v35 = vpop.f32.mrf.mxu0  ;;  %v473_v54 = vadd.f32 %v472_v32, %v2717_v0  ;;  %v2401_v32 = vld [vmem:[#allocation5 + $0x40] sm:$0xff] }
  0xe5   :  { %v377_v36 = vadd.f32 %v376_v35, %v2700_v51  ;;  %v425_v39 = vpop.f32.mrf.mxu1  ;;  %v522_v56 = vadd.f32 %v521_v34, %v2721_v2  ;;  %1501 = vmatpush.bf16.msra.mxu1 %v2401_v32 }
  0xe6   :  { %v426_v24 = vadd.f32 %v425_v39, %v2705_v53  ;;  %v803_v62 = vmax.f32 %v473_v54, 0.0 }
  0xe7   :  { %v809_v41 = vmax.f32 %v377_v36, 0.0  ;;  %v804_v3 = vmax.f32 %v522_v56, 0.0 }
  0xe8   :  { %v810_v49 = vmax.f32 %v426_v24, 0.0 }
  0xe9   :  { %v2819_v50 = vpack.c.bf16 %v809_v41, %v801_v40 }
  0xea   :  { %v2822_v55 = vpack.c.bf16 %v810_v49, %v802_v44 }
  0xeb   :  { %v474_v57 = vpop.f32.mrf.mxu2 }
  0xec   :  { %v475_v58 = vadd.f32 %v474_v57, %v2717_v0  ;;  %v523_v23 = vpop.f32.mrf.mxu3  ;;  %v379_v59 = vpop.f32.mrf.mxu0 }
  0xed   :  { %v524_v60 = vadd.f32 %v523_v23, %v2721_v2  ;;  %v428_v61 = vpop.f32.mrf.mxu1  ;;  %v380_v10 = vadd.f32 %v379_v59, %v2700_v51 }
  0xee   :  { %v811_v52 = vmax.f32 %v475_v58, 0.0  ;;  %v429_v17 = vadd.f32 %v428_v61, %v2705_v53  ;;  %v2432_v61 = vld [vmem:[#allocation5 + $0x138] sm:$0xff] }
  0xef   :  { %v812_v6 = vmax.f32 %v524_v60, 0.0  ;;  %2070 = vmatmul.msk.bf16.gmra.mxu0 %vm320_vm0, %v2658_v37  ;;  %2078 = vmatmul.msk.bf16.gmra.mxu1 %vm320_vm0, %v2658_v37  ;;  %v817_v29 = vmax.f32 %v380_v10, 0.0  ;;  %v2448_v60 = vld [vmem:[#allocation5 + $0x1b8] sm:$0xff] }
  0xf0   :  { %2086 = vmatmul.msk.bf16.gmra.mxu2 %vm320_vm0, %v2658_v37  ;;  %v2833_v8 = vpack.c.bf16 %v811_v52, %v803_v62  ;;  %v818_v33 = vmax.f32 %v429_v17, 0.0  ;;  %v2456_v62 = vld [vmem:[#allocation5 + $0x1f8] sm:$0xff]  ;;  %1641 = vmatpush.bf16.msrb.mxu0 %v2432_v61 }
  0xf1   :  { %2094 = vmatmul.msk.bf16.gmra.mxu3 %vm320_vm0, %v2658_v37  ;;  %v2837_v15 = vpack.c.bf16 %v812_v6, %v804_v3  ;;  %1739 = vmatpush.bf16.msrb.mxu2 %v2448_v60 }
  0xf2   :  { %1788 = vmatpush.bf16.msrb.mxu3 %v2456_v62 }
  0xf3   :  { %v477_v16 = vpop.f32.mrf.mxu2 }
  0xf4   :  { %v526_v18 = vpop.f32.mrf.mxu3  ;;  %v381_v19 = vpop.f32.mrf.mxu0  ;;  %v478_v36 = vadd.f32 %v477_v16, %v2717_v0 }
  0xf5   :  { %v382_v22 = vadd.f32 %v381_v19, %v2700_v51  ;;  %v430_v28 = vpop.f32.mrf.mxu1  ;;  %v527_v24 = vadd.f32 %v526_v18, %v2721_v2  ;;  %v2440_v19 = vld [vmem:[#allocation5 + $0x178] sm:$0xff] }
  0xf6   :  { %v431_v37 = vadd.f32 %v430_v28, %v2705_v53  ;;  %v819_v56 = vmax.f32 %v478_v36, 0.0  ;;  %1690 = vmatpush.bf16.msrb.mxu1 %v2440_v19 }
  0xf7   :  { %v825_v31 = vmax.f32 %v382_v22, 0.0  ;;  %v820_v58 = vmax.f32 %v527_v24, 0.0 }
  0xf8   :  { %v826_v34 = vmax.f32 %v431_v37, 0.0 }
  0xf9   :  { %v2843_v35 = vpack.c.bf16 %v825_v31, %v817_v29 }
  0xfa   :  { %v2846_v39 = vpack.c.bf16 %v826_v34, %v818_v33 }
  0xfb   :  { %v479_v40 = vpop.f32.mrf.mxu2 }
  0xfc   :  { %v480_v41 = vadd.f32 %v479_v40, %v2717_v0  ;;  %v528_v42 = vpop.f32.mrf.mxu3  ;;  %v384_v44 = vpop.f32.mrf.mxu0 }
  0xfd   :  { %v529_v49 = vadd.f32 %v528_v42, %v2721_v2  ;;  %v433_v54 = vpop.f32.mrf.mxu1  ;;  %v385_v3 = vadd.f32 %v384_v44, %v2700_v51 }
  0xfe   :  { %v827_v57 = vmax.f32 %v480_v41, 0.0  ;;  %v434_v12 = vadd.f32 %v433_v54, %v2705_v53 }
  0xff   :  { %v828_v23 = vmax.f32 %v529_v49, 0.0  ;;  %2071 = vmatmul.msk.bf16.gmra.mxu0 %vm320_vm0, %v2671_v38  ;;  %2079 = vmatmul.msk.bf16.gmra.mxu1 %vm320_vm0, %v2671_v38  ;;  %v833_v17 = vmax.f32 %v385_v3, 0.0 }
 0x100   :  { %2087 = vmatmul.msk.bf16.gmra.mxu2 %vm320_vm0, %v2671_v38  ;;  %v2857_v59 = vpack.c.bf16 %v827_v57, %v819_v56  ;;  %v834_v22 = vmax.f32 %v434_v12, 0.0  ;;  %v2447_v57 = vld [vmem:[#allocation5 + $0x1b0] sm:$0xff] }
 0x101   :  { %2095 = vmatmul.msk.bf16.gmra.mxu3 %vm320_vm0, %v2671_v38  ;;  %v2861_v52 = vpack.c.bf16 %v828_v23, %v820_v58  ;;  %v2431_v58 = vld [vmem:[#allocation5 + $0x130] sm:$0xff]  ;;  %1740 = vmatpush.bf16.msrb.mxu2 %v2447_v57  ;;  %v2454_v57 = vld [vmem:[#allocation5 + $0x1e8] sm:$0xff] }
 0x102   :  { %v2455_v23 = vld [vmem:[#allocation5 + $0x1f0] sm:$0xff]  ;;  %1642 = vmatpush.bf16.msrb.mxu0 %v2431_v58 }
 0x103   :  { %v482_v6 = vpop.f32.mrf.mxu2  ;;  %1789 = vmatpush.bf16.msrb.mxu3 %v2455_v23 }
 0x104   :  { %v531_v13 = vpop.f32.mrf.mxu3  ;;  %v386_v14 = vpop.f32.mrf.mxu0  ;;  %v483_v29 = vadd.f32 %v482_v6, %v2717_v0 }
 0x105   :  { %v387_v10 = vadd.f32 %v386_v14, %v2700_v51  ;;  %v435_v16 = vpop.f32.mrf.mxu1  ;;  %v532_v32 = vadd.f32 %v531_v13, %v2721_v2 }
 0x106   :  { %v436_v38 = vadd.f32 %v435_v16, %v2705_v53  ;;  %v835_v42 = vmax.f32 %v483_v29, 0.0 }
 0x107   :  { %v841_v18 = vmax.f32 %v387_v10, 0.0  ;;  %v836_v49 = vmax.f32 %v532_v32, 0.0  ;;  %1790 = vmatpush.bf16.msrb.mxu3 %v2454_v57  ;;  %v2453_v57 = vld [vmem:[#allocation5 + $0x1e0] sm:$0xff] }
 0x108   :  { %v842_v28 = vmax.f32 %v436_v38, 0.0  ;;  %v2439_v38 = vld [vmem:[#allocation5 + $0x170] sm:$0xff] }
 0x109   :  { %v2867_v37 = vpack.c.bf16 %v841_v18, %v833_v17  ;;  %1691 = vmatpush.bf16.msrb.mxu1 %v2439_v38 }
 0x10a   :  { %v2870_v31 = vpack.c.bf16 %v842_v28, %v834_v22 }
 0x10b   :  { %v484_v33 = vpop.f32.mrf.mxu2  ;;  %1791 = vmatpush.bf16.msrb.mxu3 %v2453_v57 }
 0x10c   :  { %v485_v34 = vadd.f32 %v484_v33, %v2717_v0  ;;  %v533_v36 = vpop.f32.mrf.mxu3  ;;  %v389_v24 = vpop.f32.mrf.mxu0 }
 0x10d   :  { %v534_v40 = vadd.f32 %v533_v36, %v2721_v2  ;;  %v438_v41 = vpop.f32.mrf.mxu1  ;;  %v390_v61 = vadd.f32 %v389_v24, %v2700_v51 }
 0x10e   :  { %v843_v44 = vmax.f32 %v485_v34, 0.0  ;;  %v439_v3 = vadd.f32 %v438_v41, %v2705_v53 }
 0x10f   :  { %v844_v54 = vmax.f32 %v534_v40, 0.0  ;;  %2072 = vmatmul.msk.bf16.gmra.mxu0 %vm320_vm0, %v2684_v43  ;;  %2080 = vmatmul.msk.bf16.gmra.mxu1 %vm320_vm0, %v2684_v43  ;;  %v849_v10 = vmax.f32 %v390_v61, 0.0 }
 0x110   :  { %2088 = vmatmul.msk.bf16.gmra.mxu2 %vm320_vm0, %v2684_v43  ;;  %v2881_v56 = vpack.c.bf16 %v843_v44, %v835_v42  ;;  %v850_v17 = vmax.f32 %v439_v3, 0.0  ;;  %v2900_v44 = vperm.slane %v2697_v48, 4 }
 0x111   :  { %2096 = vmatmul.msk.bf16.gmra.mxu3 %vm320_vm0, %v2684_v43  ;;  %v2885_v60 = vpack.c.bf16 %v844_v54, %v836_v49  ;;  %v2904_v49 = vperm.slane %v2697_v48, 5  ;;  %v2430_v54 = vld [vmem:[#allocation5 + $0x128] sm:$0xff] }
 0x112   :  { %1643 = vmatpush.bf16.msrb.mxu0 %v2430_v54  ;;  %v2429_v54 = vld [vmem:[#allocation5 + $0x120] sm:$0xff] }
 0x113   :  { %v487_v62 = vpop.f32.mrf.mxu2 }
 0x114   :  { %v536_v6 = vpop.f32.mrf.mxu3  ;;  %v391_v12 = vpop.f32.mrf.mxu0  ;;  %v488_v22 = vadd.f32 %v487_v62, %v2717_v0 }
 0x115   :  { %v392_v13 = vadd.f32 %v391_v12, %v2700_v51  ;;  %v440_v14 = vpop.f32.mrf.mxu1  ;;  %v537_v29 = vadd.f32 %v536_v6, %v2721_v2 }
 0x116   :  { %v441_v43 = vadd.f32 %v440_v14, %v2705_v53  ;;  %v851_v24 = vmax.f32 %v488_v22, 0.0  ;;  %1644 = vmatpush.bf16.msrb.mxu0 %v2429_v54  ;;  %v2452_v54 = vld [vmem:[#allocation5 + $0x1d8] sm:$0xff] }
 0x117   :  { %v857_v16 = vmax.f32 %v392_v13, 0.0  ;;  %v852_v41 = vmax.f32 %v537_v29, 0.0  ;;  %v2921_v13 = vperm.slane %v2697_v48, 7  ;;  %1792 = vmatpush.bf16.msrb.mxu3 %v2452_v54 }
 0x118   :  { %v858_v18 = vmax.f32 %v441_v43, 0.0  ;;  %v2438_v43 = vld [vmem:[#allocation5 + $0x168] sm:$0xff] }
 0x119   :  { %v2891_v19 = vpack.c.bf16 %v857_v16, %v849_v10  ;;  %1692 = vmatpush.bf16.msrb.mxu1 %v2438_v43 }
 0x11a   :  { %v2894_v28 = vpack.c.bf16 %v858_v18, %v850_v17 }
 0x11b   :  { %v489_v32 = vpop.f32.mrf.mxu2 }
 0x11c   :  { %v490_v51 = vadd.f32 %v489_v32, %v2717_v0  ;;  %v538_v33 = vpop.f32.mrf.mxu3  ;;  %v550_v34 = vpop.f32.mrf.mxu0 }
 0x11d   :  { %v539_v53 = vadd.f32 %v538_v33, %v2721_v2  ;;  %v599_v36 = vpop.f32.mrf.mxu1  ;;  %v2446_v2 = vld [vmem:[#allocation5 + $0x1a8] sm:$0xff]  ;;  %v551_v23 = vadd.f32 %v550_v34, %v2900_v44 }
 0x11e   :  { %v859_v40 = vmax.f32 %v490_v51, 0.0  ;;  %1741 = vmatpush.bf16.msrb.mxu2 %v2446_v2  ;;  %v2445_v2 = vld [vmem:[#allocation5 + $0x1a0] sm:$0xff] }
 0x11f   :  { %v860_v42 = vmax.f32 %v539_v53, 0.0  ;;  %1453 = vmatmul.bf16.vlgmr.msra.gmra.mxu0 %v2723_v7  ;;  %1502 = vmatmul.bf16.vlgmr.msra.gmra.mxu1 %v2726_v11  ;;  %v600_v7 = vadd.f32 %v599_v36, %v2904_v49  ;;  %v741_v12 = vmax.f32 %v551_v23, 0.0 }
 0x120   :  { %1551 = vmatmul.bf16.vlgmr.msra.gmra.mxu2 %v2733_v25  ;;  %v2908_v0 = vpack.c.bf16 %v859_v40, %v851_v24 }
 0x121   :  { %1600 = vmatmul.bf16.vlgmr.msra.gmra.mxu3 %v2739_v26  ;;  %v2911_v58 = vpack.c.bf16 %v860_v42, %v852_v41  ;;  %v2917_v26 = vperm.slane %v2697_v48, 6  ;;  %v742_v10 = vmax.f32 %v600_v7, 0.0 }
 0x122   :  { %1742 = vmatpush.bf16.msrb.mxu2 %v2445_v2  ;;  %v2428_v2 = vld [vmem:[#allocation5 + $0x118] sm:$0xff] }
 0x123   :  { %v648_v61 = vpop.f32.mrf.mxu2  ;;  %1645 = vmatpush.bf16.msrb.mxu0 %v2428_v2  ;;  %v2451_v2 = vld [vmem:[#allocation5 + $0x1d0] sm:$0xff] }
 0x124   :  { %v697_v62 = vpop.f32.mrf.mxu3  ;;  %v552_v11 = vpop.f32.mrf.mxu0  ;;  %v649_v17 = vadd.f32 %v648_v61, %v2917_v26  ;;  %1793 = vmatpush.bf16.msrb.mxu3 %v2451_v2 }
 0x125   :  { %v553_v25 = vadd.f32 %v552_v11, %v2900_v44  ;;  %v601_v3 = vpop.f32.mrf.mxu1  ;;  %v698_v22 = vadd.f32 %v697_v62, %v2921_v13 }
 0x126   :  { %v602_v6 = vadd.f32 %v601_v3, %v2904_v49  ;;  %v743_v53 = vmax.f32 %v649_v17, 0.0  ;;  %v2437_v3 = vld [vmem:[#allocation5 + $0x160] sm:$0xff] }
 0x127   :  { %v749_v14 = vmax.f32 %v553_v25, 0.0  ;;  %v744_v24 = vmax.f32 %v698_v22, 0.0  ;;  %1693 = vmatpush.bf16.msrb.mxu1 %v2437_v3 }
 0x128   :  { %v750_v16 = vmax.f32 %v602_v6, 0.0 }
 0x129   :  { %v2923_v38 = vpack.c.bf16 %v749_v14, %v741_v12 }
 0x12a   :  { %v2926_v18 = vpack.c.bf16 %v750_v16, %v742_v10 }
 0x12b   :  { %v650_v29 = vpop.f32.mrf.mxu2 }
 0x12c   :  { %v651_v32 = vadd.f32 %v650_v29, %v2917_v26  ;;  %v699_v51 = vpop.f32.mrf.mxu3  ;;  %v555_v33 = vpop.f32.mrf.mxu0 }
 0x12d   :  { %v700_v48 = vadd.f32 %v699_v51, %v2921_v13  ;;  %v604_v34 = vpop.f32.mrf.mxu1  ;;  %v556_v23 = vadd.f32 %v555_v33, %v2900_v44 }
 0x12e   :  { %v751_v36 = vmax.f32 %v651_v32, 0.0 }
 0x12f   :  { %v752_v40 = vmax.f32 %v700_v48, 0.0  ;;  %1458 = vmatmul.bf16.gmra.mxu0 %v2747_v45  ;;  %1507 = vmatmul.bf16.gmra.mxu1 %v2750_v47  ;;  %v605_v45 = vadd.f32 %v604_v34, %v2904_v49  ;;  %v757_v25 = vmax.f32 %v556_v23, 0.0 }
 0x130   :  { %v2932_v41 = vpack.c.bf16 %v751_v36, %v743_v53  ;;  %1556 = vmatmul.bf16.gmra.mxu2 %v2761_v63 }
 0x131   :  { %v2936_v42 = vpack.c.bf16 %v752_v40, %v744_v24  ;;  %1605 = vmatmul.bf16.gmra.mxu3 %v2765_v4  ;;  %v758_v6 = vmax.f32 %v605_v45, 0.0  ;;  %v2444_v40 = vld [vmem:[#allocation5 + $0x198] sm:$0xff] }
 0x132   :  { %1743 = vmatpush.bf16.msrb.mxu2 %v2444_v40  ;;  %v2427_v40 = vld [vmem:[#allocation5 + $0x110] sm:$0xff] }
 0x133   :  { %v653_v61 = vpop.f32.mrf.mxu2  ;;  %1646 = vmatpush.bf16.msrb.mxu0 %v2427_v40  ;;  %v2450_v40 = vld [vmem:[#allocation5 + $0x1c8] sm:$0xff] }
 0x134   :  { %v702_v7 = vpop.f32.mrf.mxu3  ;;  %v557_v62 = vpop.f32.mrf.mxu0  ;;  %v654_v43 = vadd.f32 %v653_v61, %v2917_v26  ;;  %1794 = vmatpush.bf16.msrb.mxu3 %v2450_v40 }
 0x135   :  { %v558_v47 = vadd.f32 %v557_v62, %v2900_v44  ;;  %v606_v63 = vpop.f32.mrf.mxu1  ;;  %v703_v16 = vadd.f32 %v702_v7, %v2921_v13 }
 0x136   :  { %v607_v11 = vadd.f32 %v606_v63, %v2904_v49  ;;  %v759_v48 = vmax.f32 %v654_v43, 0.0  ;;  %v2436_v63 = vld [vmem:[#allocation5 + $0x158] sm:$0xff] }
 0x137   :  { %v765_v4 = vmax.f32 %v558_v47, 0.0  ;;  %v760_v53 = vmax.f32 %v703_v16, 0.0  ;;  %1694 = vmatpush.bf16.msrb.mxu1 %v2436_v63 }
 0x138   :  { %v766_v12 = vmax.f32 %v607_v11, 0.0 }
 0x139   :  { %v2943_v14 = vpack.c.bf16 %v765_v4, %v757_v25 }
 0x13a   :  { %v2946_v10 = vpack.c.bf16 %v766_v12, %v758_v6 }
 0x13b   :  { %v655_v17 = vpop.f32.mrf.mxu2 }
 0x13c   :  { %v656_v22 = vadd.f32 %v655_v17, %v2917_v26  ;;  %v704_v29 = vpop.f32.mrf.mxu3  ;;  %v560_v32 = vpop.f32.mrf.mxu0 }
 0x13d   :  { %v705_v51 = vadd.f32 %v704_v29, %v2921_v13  ;;  %v609_v33 = vpop.f32.mrf.mxu1  ;;  %v561_v23 = vadd.f32 %v560_v32, %v2900_v44 }
 0x13e   :  { %v767_v34 = vmax.f32 %v656_v22, 0.0 }
 0x13f   :  { %v768_v36 = vmax.f32 %v705_v51, 0.0  ;;  %1463 = vmatmul.bf16.gmra.mxu0 %v2771_v21  ;;  %1512 = vmatmul.bf16.gmra.mxu1 %v2774_v27  ;;  %v610_v21 = vadd.f32 %v609_v33, %v2904_v49  ;;  %v773_v62 = vmax.f32 %v561_v23, 0.0 }
 0x140   :  { %1561 = vmatmul.bf16.gmra.mxu2 %v2785_v9  ;;  %v2954_v24 = vpack.c.bf16 %v767_v34, %v759_v48 }
 0x141   :  { %1610 = vmatmul.bf16.gmra.mxu3 %v2789_v46  ;;  %v2957_v57 = vpack.c.bf16 %v768_v36, %v760_v53  ;;  %v774_v11 = vmax.f32 %v610_v21, 0.0  ;;  %v2443_v36 = vld [vmem:[#allocation5 + $0x190] sm:$0xff] }
 0x142   :  { %1744 = vmatpush.bf16.msrb.mxu2 %v2443_v36  ;;  %v2426_v36 = vld [vmem:[#allocation5 + $0x108] sm:$0xff] }
 0x143   :  { %v658_v61 = vpop.f32.mrf.mxu2  ;;  %1647 = vmatpush.bf16.msrb.mxu0 %v2426_v36  ;;  %v2449_v36 = vld [vmem:[#allocation5 + $0x1c0] sm:$0xff] }
 0x144   :  { %v707_v45 = vpop.f32.mrf.mxu3  ;;  %v562_v27 = vpop.f32.mrf.mxu0  ;;  %v659_v3 = vadd.f32 %v658_v61, %v2917_v26  ;;  %1795 = vmatpush.bf16.msrb.mxu3 %v2449_v36 }
 0x145   :  { %v563_v9 = vadd.f32 %v562_v27, %v2900_v44  ;;  %v611_v7 = vpop.f32.mrf.mxu1  ;;  %v708_v12 = vadd.f32 %v707_v45, %v2921_v13 }
 0x146   :  { %v612_v46 = vadd.f32 %v611_v7, %v2904_v49  ;;  %v775_v51 = vmax.f32 %v659_v3, 0.0  ;;  %v2435_v7 = vld [vmem:[#allocation5 + $0x150] sm:$0xff] }
 0x147   :  { %v781_v47 = vmax.f32 %v563_v9, 0.0  ;;  %v776_v48 = vmax.f32 %v708_v12, 0.0  ;;  %1695 = vmatpush.bf16.msrb.mxu1 %v2435_v7 }
 0x148   :  { %v782_v25 = vmax.f32 %v612_v46, 0.0 }
 0x149   :  { %v2963_v4 = vpack.c.bf16 %v781_v47, %v773_v62 }
 0x14a   :  { %v2966_v6 = vpack.c.bf16 %v782_v25, %v774_v11 }
 0x14b   :  { %v660_v43 = vpop.f32.mrf.mxu2 }
 0x14c   :  { %v661_v16 = vadd.f32 %v660_v43, %v2917_v26  ;;  %v709_v17 = vpop.f32.mrf.mxu3  ;;  %v565_v22 = vpop.f32.mrf.mxu0 }
 0x14d   :  { %v710_v29 = vadd.f32 %v709_v17, %v2921_v13  ;;  %v614_v32 = vpop.f32.mrf.mxu1  ;;  %v566_v23 = vadd.f32 %v565_v22, %v2900_v44 }
 0x14e   :  { %v783_v33 = vmax.f32 %v661_v16, 0.0 }
 0x14f   :  { %v784_v34 = vmax.f32 %v710_v29, 0.0  ;;  %1468 = vmatmul.bf16.gmra.mxu0 %v2795_v1  ;;  %1517 = vmatmul.bf16.gmra.mxu1 %v2798_v5  ;;  %v615_v1 = vadd.f32 %v614_v32, %v2904_v49  ;;  %v789_v27 = vmax.f32 %v566_v23, 0.0 }
 0x150   :  { %1566 = vmatmul.bf16.gmra.mxu2 %v2809_v20  ;;  %v2974_v53 = vpack.c.bf16 %v783_v33, %v775_v51 }
 0x151   :  { %1615 = vmatmul.bf16.gmra.mxu3 %v2813_v30  ;;  %v2977_v54 = vpack.c.bf16 %v784_v34, %v776_v48  ;;  %v790_v46 = vmax.f32 %v615_v1, 0.0  ;;  %v2442_v34 = vld [vmem:[#allocation5 + $0x188] sm:$0xff] }
 0x152   :  { %1745 = vmatpush.bf16.msrb.mxu2 %v2442_v34  ;;  %v2425_v34 = vld [vmem:[#allocation5 + $0x100] sm:$0xff] }
 0x153   :  { %v663_v61 = vpop.f32.mrf.mxu2  ;;  %1648 = vmatpush.bf16.msrb.mxu0 %v2425_v34 }
 0x154   :  { %v712_v21 = vpop.f32.mrf.mxu3  ;;  %v567_v5 = vpop.f32.mrf.mxu0  ;;  %v664_v63 = vadd.f32 %v663_v61, %v2917_v26 }
 0x155   :  { %v568_v20 = vadd.f32 %v567_v5, %v2900_v44  ;;  %v616_v45 = vpop.f32.mrf.mxu1  ;;  %v713_v25 = vadd.f32 %v712_v21, %v2921_v13 }
 0x156   :  { %v617_v30 = vadd.f32 %v616_v45, %v2904_v49  ;;  %v791_v29 = vmax.f32 %v664_v63, 0.0  ;;  %v2434_v45 = vld [vmem:[#allocation5 + $0x148] sm:$0xff] }
 0x157   :  { %v797_v9 = vmax.f32 %v568_v20, 0.0  ;;  %v792_v51 = vmax.f32 %v713_v25, 0.0  ;;  %1696 = vmatpush.bf16.msrb.mxu1 %v2434_v45 }
 0x158   :  { %v798_v62 = vmax.f32 %v617_v30, 0.0 }
 0x159   :  { %v2983_v47 = vpack.c.bf16 %v797_v9, %v789_v27 }
 0x15a   :  { %v2986_v11 = vpack.c.bf16 %v798_v62, %v790_v46 }
 0x15b   :  { %v665_v3 = vpop.f32.mrf.mxu2 }
 0x15c   :  { %v666_v12 = vadd.f32 %v665_v3, %v2917_v26  ;;  %v714_v43 = vpop.f32.mrf.mxu3  ;;  %v570_v16 = vpop.f32.mrf.mxu0 }
 0x15d   :  { %v715_v17 = vadd.f32 %v714_v43, %v2921_v13  ;;  %v619_v22 = vpop.f32.mrf.mxu1  ;;  %v571_v23 = vadd.f32 %v570_v16, %v2900_v44 }
 0x15e   :  { %v799_v32 = vmax.f32 %v666_v12, 0.0 }
 0x15f   :  { %v800_v33 = vmax.f32 %v715_v17, 0.0  ;;  %1473 = vmatmul.bf16.gmra.mxu0 %v2819_v50  ;;  %1522 = vmatmul.bf16.gmra.mxu1 %v2822_v55  ;;  %v620_v50 = vadd.f32 %v619_v22, %v2904_v49  ;;  %v805_v5 = vmax.f32 %v571_v23, 0.0 }
 0x160   :  { %1571 = vmatmul.bf16.gmra.mxu2 %v2833_v8  ;;  %v2994_v48 = vpack.c.bf16 %v799_v32, %v791_v29 }
 0x161   :  { %1620 = vmatmul.bf16.gmra.mxu3 %v2837_v15  ;;  %v2997_v2 = vpack.c.bf16 %v800_v33, %v792_v51  ;;  %v806_v30 = vmax.f32 %v620_v50, 0.0  ;;  %v2441_v33 = vld [vmem:[#allocation5 + $0x180] sm:$0xff] }
 0x162   :  { %1746 = vmatpush.bf16.msrb.mxu2 %v2441_v33 }
 0x163   :  { %v668_v61 = vpop.f32.mrf.mxu2 }
 0x164   :  { %v717_v1 = vpop.f32.mrf.mxu3  ;;  %v572_v55 = vpop.f32.mrf.mxu0  ;;  %v669_v7 = vadd.f32 %v668_v61, %v2917_v26 }
 0x165   :  { %v573_v8 = vadd.f32 %v572_v55, %v2900_v44  ;;  %v621_v21 = vpop.f32.mrf.mxu1  ;;  %v718_v62 = vadd.f32 %v717_v1, %v2921_v13 }
 0x166   :  { %v622_v15 = vadd.f32 %v621_v21, %v2904_v49  ;;  %v807_v17 = vmax.f32 %v669_v7, 0.0  ;;  %v2433_v21 = vld [vmem:[#allocation5 + $0x140] sm:$0xff] }
 0x167   :  { %v813_v20 = vmax.f32 %v573_v8, 0.0  ;;  %v808_v29 = vmax.f32 %v718_v62, 0.0  ;;  %1697 = vmatpush.bf16.msrb.mxu1 %v2433_v21 }
 0x168   :  { %v814_v27 = vmax.f32 %v622_v15, 0.0 }
 0x169   :  { %v3003_v9 = vpack.c.bf16 %v813_v20, %v805_v5 }
 0x16a   :  { %v3006_v46 = vpack.c.bf16 %v814_v27, %v806_v30 }
 0x16b   :  { %v670_v63 = vpop.f32.mrf.mxu2 }
 0x16c   :  { %v671_v25 = vadd.f32 %v670_v63, %v2917_v26  ;;  %v719_v3 = vpop.f32.mrf.mxu3  ;;  %v575_v12 = vpop.f32.mrf.mxu0 }
 0x16d   :  { %v720_v43 = vadd.f32 %v719_v3, %v2921_v13  ;;  %v624_v16 = vpop.f32.mrf.mxu1  ;;  %v576_v23 = vadd.f32 %v575_v12, %v2900_v44 }
 0x16e   :  { %v815_v22 = vmax.f32 %v671_v25, 0.0 }
 0x16f   :  { %v816_v32 = vmax.f32 %v720_v43, 0.0  ;;  %1478 = vmatmul.bf16.gmra.mxu0 %v2843_v35  ;;  %1527 = vmatmul.bf16.gmra.mxu1 %v2846_v39  ;;  %v625_v35 = vadd.f32 %v624_v16, %v2904_v49  ;;  %v821_v55 = vmax.f32 %v576_v23, 0.0 }
 0x170   :  { %1576 = vmatmul.bf16.gmra.mxu2 %v2857_v59  ;;  %v3014_v51 = vpack.c.bf16 %v815_v22, %v807_v17 }
 0x171   :  { %1625 = vmatmul.bf16.gmra.mxu3 %v2861_v52  ;;  %v3017_v40 = vpack.c.bf16 %v816_v32, %v808_v29  ;;  %v822_v15 = vmax.f32 %v625_v35, 0.0 }
 0x173   :  { %v673_v61 = vpop.f32.mrf.mxu2 }
 0x174   :  { %v722_v50 = vpop.f32.mrf.mxu3  ;;  %v577_v39 = vpop.f32.mrf.mxu0  ;;  %v674_v45 = vadd.f32 %v673_v61, %v2917_v26 }
 0x175   :  { %v578_v59 = vadd.f32 %v577_v39, %v2900_v44  ;;  %v626_v1 = vpop.f32.mrf.mxu1  ;;  %v723_v27 = vadd.f32 %v722_v50, %v2921_v13 }
 0x176   :  { %v627_v52 = vadd.f32 %v626_v1, %v2904_v49  ;;  %v823_v43 = vmax.f32 %v674_v45, 0.0 }
 0x177   :  { %v829_v8 = vmax.f32 %v578_v59, 0.0  ;;  %v824_v17 = vmax.f32 %v723_v27, 0.0 }
 0x178   :  { %v830_v5 = vmax.f32 %v627_v52, 0.0 }
 0x179   :  { %v3023_v20 = vpack.c.bf16 %v829_v8, %v821_v55 }
 0x17a   :  { %v3026_v30 = vpack.c.bf16 %v830_v5, %v822_v15 }
 0x17b   :  { %v675_v7 = vpop.f32.mrf.mxu2 }
 0x17c   :  { %v676_v62 = vadd.f32 %v675_v7, %v2917_v26  ;;  %v724_v63 = vpop.f32.mrf.mxu3  ;;  %v580_v25 = vpop.f32.mrf.mxu0 }
 0x17d   :  { %v725_v3 = vadd.f32 %v724_v63, %v2921_v13  ;;  %v629_v12 = vpop.f32.mrf.mxu1  ;;  %v581_v33 = vadd.f32 %v580_v25, %v2900_v44 }
 0x17e   :  { %v831_v16 = vmax.f32 %v676_v62, 0.0  ;;  %v630_v36 = vadd.f32 %v629_v12, %v2904_v49 }
 0x17f   :  { %v832_v22 = vmax.f32 %v725_v3, 0.0  ;;  %1483 = vmatmul.bf16.gmra.mxu0 %v2867_v37  ;;  %1532 = vmatmul.bf16.gmra.mxu1 %v2870_v31  ;;  %v837_v50 = vmax.f32 %v581_v33, 0.0 }
 0x180   :  { %1581 = vmatmul.bf16.gmra.mxu2 %v2881_v56  ;;  %v3034_v29 = vpack.c.bf16 %v831_v16, %v823_v43  ;;  %v838_v39 = vmax.f32 %v630_v36, 0.0 }
 0x181   :  { %1630 = vmatmul.bf16.gmra.mxu3 %v2885_v60  ;;  %v3037_v32 = vpack.c.bf16 %v832_v22, %v824_v17 }
 0x183   :  { %v678_v34 = vpop.f32.mrf.mxu2 }
 0x184   :  { %v727_v23 = vpop.f32.mrf.mxu3  ;;  %v582_v61 = vpop.f32.mrf.mxu0  ;;  %v679_v60 = vadd.f32 %v678_v34, %v2917_v26 }
 0x185   :  { %v583_v35 = vadd.f32 %v582_v61, %v2900_v44  ;;  %v631_v37 = vpop.f32.mrf.mxu1  ;;  %v728_v55 = vadd.f32 %v727_v23, %v2921_v13 }
 0x186   :  { %v632_v31 = vadd.f32 %v631_v37, %v2904_v49  ;;  %v839_v7 = vmax.f32 %v679_v60, 0.0 }
 0x187   :  { %v845_v56 = vmax.f32 %v583_v35, 0.0  ;;  %v840_v63 = vmax.f32 %v728_v55, 0.0 }
 0x188   :  { %v846_v59 = vmax.f32 %v632_v31, 0.0 }
 0x189   :  { %v3043_v1 = vpack.c.bf16 %v845_v56, %v837_v50 }
 0x18a   :  { %v3046_v52 = vpack.c.bf16 %v846_v59, %v838_v39 }
 0x18b   :  { %v680_v8 = vpop.f32.mrf.mxu2 }
 0x18c   :  { %v681_v21 = vadd.f32 %v680_v8, %v2917_v26  ;;  %v729_v15 = vpop.f32.mrf.mxu3  ;;  %v585_v5 = vpop.f32.mrf.mxu0 }
 0x18d   :  { %v730_v45 = vadd.f32 %v729_v15, %v2921_v13  ;;  %v634_v27 = vpop.f32.mrf.mxu1  ;;  %v586_v43 = vadd.f32 %v585_v5, %v2900_v44 }
 0x18e   :  { %v847_v62 = vmax.f32 %v681_v21, 0.0  ;;  %v635_v17 = vadd.f32 %v634_v27, %v2904_v49 }
 0x18f   :  { %v848_v25 = vmax.f32 %v730_v45, 0.0  ;;  %1488 = vmatmul.bf16.gmra.mxu0 %v2891_v19  ;;  %1537 = vmatmul.bf16.gmra.mxu1 %v2894_v28  ;;  %v853_v36 = vmax.f32 %v586_v43, 0.0 }
 0x190   :  { %1586 = vmatmul.bf16.gmra.mxu2 %v2908_v0  ;;  %v3054_v3 = vpack.c.bf16 %v847_v62, %v839_v7  ;;  %v854_v23 = vmax.f32 %v635_v17, 0.0 }
 0x191   :  { %1635 = vmatmul.bf16.gmra.mxu3 %v2911_v58  ;;  %v3057_v12 = vpack.c.bf16 %v848_v25, %v840_v63  ;;  %v3066_v58 = vld [vmem:[%s3183_s4] ss:$0 sm:$0xff]  ;;  %s2551_s4 = smov [#allocation7]  }
 0x192   :  { %s1857_s23 = sshll.u32 %s2551_s4, 4  ;;  %s1858_s23 = int_to_ptr.vmem [resolvable:$true] %s1857_s23 }
 0x193   :  { %v683_v16 = vpop.f32.mrf.mxu2 }
 0x194   :  { %v732_v22 = vpop.f32.mrf.mxu3  ;;  %v587_v33 = vpop.f32.mrf.mxu0  ;;  %v684_v37 = vadd.f32 %v683_v16, %v2917_v26 }
 0x195   :  { %v588_v34 = vadd.f32 %v587_v33, %v2900_v44  ;;  %v636_v19 = vpop.f32.mrf.mxu1  ;;  %v733_v44 = vadd.f32 %v732_v22, %v2921_v13 }
 0x196   :  { %v637_v28 = vadd.f32 %v636_v19, %v2904_v49  ;;  %v855_v8 = vmax.f32 %v684_v37, 0.0 }
 0x197   :  { %v861_v0 = vmax.f32 %v588_v34, 0.0  ;;  %v856_v15 = vmax.f32 %v733_v44, 0.0 }
 0x198   :  { %v862_v61 = vmax.f32 %v637_v28, 0.0 }
 0x199   :  { %v3068_v35 = vpack.c.bf16 %v861_v0, %v853_v36 }
 0x19a   :  { %v3071_v31 = vpack.c.bf16 %v862_v61, %v854_v23 }
 0x19b   :  { %v685_v50 = vpop.f32.mrf.mxu2 }
 0x19c   :  { %v686_v49 = vadd.f32 %v685_v50, %v2917_v26  ;;  %v734_v56 = vpop.f32.mrf.mxu3  ;;  %v1454_v39 = vpop.f32.mrf.mxu0 }
 0x19d   :  { %v735_v59 = vadd.f32 %v734_v56, %v2921_v13  ;;  %v1455_v60 = vadd.f32 %v3066_v58, %v1454_v39  ;;  %v1503_v55 = vpop.f32.mrf.mxu1 }
 0x19e   :  { %v863_v21 = vmax.f32 %v686_v49, 0.0 }
 0x19f   :  { %v864_v5 = vmax.f32 %v735_v59, 0.0  ;;  %v1504_v45 = vadd.f32 %v1503_v55, %v1455_v60  ;;  %1649 = vmatmul.bf16.vlgmr.msrb.gmra.mxu0 %v2923_v38  ;;  %1698 = vmatmul.bf16.vlgmr.msrb.gmra.mxu1 %v2926_v18 }
 0x1a0   :  { %1747 = vmatmul.bf16.vlgmr.msrb.gmra.mxu2 %v2932_v41  ;;  %v3080_v27 = vpack.c.bf16 %v863_v21, %v855_v8 }
 0x1a1   :  { %1796 = vmatmul.bf16.vlgmr.msrb.gmra.mxu3 %v2936_v42  ;;  %v3083_v26 = vpack.c.bf16 %v864_v5, %v856_v15 }
 0x1a3   :  { %v1552_v13 = vpop.f32.mrf.mxu2 }
 0x1a4   :  { %v1553_v7 = vadd.f32 %v1552_v13, %v1504_v45  ;;  %v1601_v62 = vpop.f32.mrf.mxu3  ;;  %v1456_v63 = vpop.f32.mrf.mxu0 }
 0x1a5   :  { %v1457_v25 = vadd.f32 %v3066_v58, %v1456_v63  ;;  %v1505_v43 = vpop.f32.mrf.mxu1 }
 0x1a6   :  { %v3086_v16 = vadd.f32 %v1601_v62, %v1553_v7 }
 0x1a7   :  { %v1506_v38 = vadd.f32 %v1505_v43, %v1457_v25 }
 0x1ab   :  { %v1554_v17 = vpop.f32.mrf.mxu2 }
 0x1ac   :  { %v1555_v18 = vadd.f32 %v1554_v17, %v1506_v38  ;;  %v1603_v22 = vpop.f32.mrf.mxu3  ;;  %v1459_v41 = vpop.f32.mrf.mxu0 }
 0x1ad   :  { %v1460_v33 = vadd.f32 %v3066_v58, %v1459_v41  ;;  %v1508_v34 = vpop.f32.mrf.mxu1 }
 0x1ae   :  { %v3089_v42 = vadd.f32 %v1603_v22, %v1555_v18 }
 0x1af   :  { %v1509_v19 = vadd.f32 %v1508_v34, %v1460_v33  ;;  %1654 = vmatmul.bf16.gmra.mxu0 %v2943_v14  ;;  %1703 = vmatmul.bf16.gmra.mxu1 %v2946_v10 }
 0x1b0   :  { %1752 = vmatmul.bf16.gmra.mxu2 %v2954_v24 }
 0x1b1   :  { %1801 = vmatmul.bf16.gmra.mxu3 %v2957_v57 }
 0x1b3   :  { %v1557_v28 = vpop.f32.mrf.mxu2 }
 0x1b4   :  { %v1558_v36 = vadd.f32 %v1557_v28, %v1509_v19  ;;  %v1606_v0 = vpop.f32.mrf.mxu3  ;;  %v1461_v23 = vpop.f32.mrf.mxu0 }
 0x1b5   :  { %v1462_v61 = vadd.f32 %v3066_v58, %v1461_v23  ;;  %v1510_v37 = vpop.f32.mrf.mxu1 }
 0x1b6   :  { %v3096_v44 = vadd.f32 %v1606_v0, %v1558_v36 }
 0x1b7   :  { %v1511_v50 = vadd.f32 %v1510_v37, %v1462_v61 }
 0x1bb   :  { %v1559_v49 = vpop.f32.mrf.mxu2 }
 0x1bc   :  { %v1560_v56 = vadd.f32 %v1559_v49, %v1511_v50  ;;  %v1608_v39 = vpop.f32.mrf.mxu3  ;;  %v1464_v14 = vpop.f32.mrf.mxu0 }
 0x1bd   :  { %v1465_v10 = vadd.f32 %v3066_v58, %v1464_v14  ;;  %v1513_v59 = vpop.f32.mrf.mxu1 }
 0x1be   :  { %v3099_v24 = vadd.f32 %v1608_v39, %v1560_v56 }
 0x1bf   :  { %v1514_v57 = vadd.f32 %v1513_v59, %v1465_v10  ;;  %1659 = vmatmul.bf16.gmra.mxu0 %v2963_v4  ;;  %1708 = vmatmul.bf16.gmra.mxu1 %v2966_v6 }
 0x1c0   :  { %1757 = vmatmul.bf16.gmra.mxu2 %v2974_v53 }
 0x1c1   :  { %1806 = vmatmul.bf16.gmra.mxu3 %v2977_v54 }
 0x1c3   :  { %v1562_v60 = vpop.f32.mrf.mxu2 }
 0x1c4   :  { %v1563_v55 = vadd.f32 %v1562_v60, %v1514_v57  ;;  %v1611_v8 = vpop.f32.mrf.mxu3  ;;  %v1466_v21 = vpop.f32.mrf.mxu0 }
 0x1c5   :  { %v1467_v15 = vadd.f32 %v3066_v58, %v1466_v21  ;;  %v1515_v5 = vpop.f32.mrf.mxu1 }
 0x1c6   :  { %v3106_v45 = vadd.f32 %v1611_v8, %v1563_v55 }
 0x1c7   :  { %v1516_v13 = vadd.f32 %v1515_v5, %v1467_v15 }
 0x1cb   :  { %v1564_v7 = vpop.f32.mrf.mxu2 }
 0x1cc   :  { %v1565_v62 = vadd.f32 %v1564_v7, %v1516_v13  ;;  %v1613_v63 = vpop.f32.mrf.mxu3  ;;  %v1469_v4 = vpop.f32.mrf.mxu0 }
 0x1cd   :  { %v1470_v6 = vadd.f32 %v3066_v58, %v1469_v4  ;;  %v1518_v25 = vpop.f32.mrf.mxu1 }
 0x1ce   :  { %v3109_v53 = vadd.f32 %v1613_v63, %v1565_v62 }
 0x1cf   :  { %v1519_v54 = vadd.f32 %v1518_v25, %v1470_v6  ;;  %1664 = vmatmul.bf16.gmra.mxu0 %v2983_v47  ;;  %1713 = vmatmul.bf16.gmra.mxu1 %v2986_v11 }
 0x1d0   :  { %1762 = vmatmul.bf16.gmra.mxu2 %v2994_v48 }
 0x1d1   :  { %1811 = vmatmul.bf16.gmra.mxu3 %v2997_v2 }
 0x1d3   :  { %v1567_v43 = vpop.f32.mrf.mxu2 }
 0x1d4   :  { %v1568_v38 = vadd.f32 %v1567_v43, %v1519_v54  ;;  %v1616_v17 = vpop.f32.mrf.mxu3  ;;  %v1471_v18 = vpop.f32.mrf.mxu0 }
 0x1d5   :  { %v1472_v22 = vadd.f32 %v3066_v58, %v1471_v18  ;;  %v1520_v41 = vpop.f32.mrf.mxu1 }
 0x1d6   :  { %v3116_v33 = vadd.f32 %v1616_v17, %v1568_v38 }
 0x1d7   :  { %v1521_v34 = vadd.f32 %v1520_v41, %v1472_v22 }
 0x1db   :  { %v1569_v19 = vpop.f32.mrf.mxu2 }
 0x1dc   :  { %v1570_v28 = vadd.f32 %v1569_v19, %v1521_v34  ;;  %v1618_v36 = vpop.f32.mrf.mxu3  ;;  %v1474_v47 = vpop.f32.mrf.mxu0 }
 0x1dd   :  { %v1475_v11 = vadd.f32 %v3066_v58, %v1474_v47  ;;  %v1523_v0 = vpop.f32.mrf.mxu1 }
 0x1de   :  { %v3119_v48 = vadd.f32 %v1618_v36, %v1570_v28 }
 0x1df   :  { %v1524_v2 = vadd.f32 %v1523_v0, %v1475_v11  ;;  %1669 = vmatmul.bf16.gmra.mxu0 %v3003_v9  ;;  %1718 = vmatmul.bf16.gmra.mxu1 %v3006_v46 }
 0x1e0   :  { %1767 = vmatmul.bf16.gmra.mxu2 %v3014_v51 }
 0x1e1   :  { %1816 = vmatmul.bf16.gmra.mxu3 %v3017_v40 }
 0x1e3   :  { %v1572_v23 = vpop.f32.mrf.mxu2 }
 0x1e4   :  { %v1573_v61 = vadd.f32 %v1572_v23, %v1524_v2  ;;  %v1621_v37 = vpop.f32.mrf.mxu3  ;;  %v1476_v50 = vpop.f32.mrf.mxu0 }
 0x1e5   :  { %v1477_v49 = vadd.f32 %v3066_v58, %v1476_v50  ;;  %v1525_v56 = vpop.f32.mrf.mxu1 }
 0x1e6   :  { %v3126_v39 = vadd.f32 %v1621_v37, %v1573_v61 }
 0x1e7   :  { %v1526_v14 = vadd.f32 %v1525_v56, %v1477_v49 }
 0x1eb   :  { %v1574_v10 = vpop.f32.mrf.mxu2 }
 0x1ec   :  { %v1575_v59 = vadd.f32 %v1574_v10, %v1526_v14  ;;  %v1623_v57 = vpop.f32.mrf.mxu3  ;;  %v1479_v9 = vpop.f32.mrf.mxu0 }
 0x1ed   :  { %v1480_v46 = vadd.f32 %v3066_v58, %v1479_v9  ;;  %v1528_v60 = vpop.f32.mrf.mxu1 }
 0x1ee   :  { %v3129_v51 = vadd.f32 %v1623_v57, %v1575_v59 }
 0x1ef   :  { %v1529_v40 = vadd.f32 %v1528_v60, %v1480_v46  ;;  %1674 = vmatmul.bf16.gmra.mxu0 %v3023_v20  ;;  %1723 = vmatmul.bf16.gmra.mxu1 %v3026_v30 }
 0x1f0   :  { %1772 = vmatmul.bf16.gmra.mxu2 %v3034_v29 }
 0x1f1   :  { %1821 = vmatmul.bf16.gmra.mxu3 %v3037_v32 }
 0x1f3   :  { %v1577_v55 = vpop.f32.mrf.mxu2 }
 0x1f4   :  { %v1578_v8 = vadd.f32 %v1577_v55, %v1529_v40  ;;  %v1626_v21 = vpop.f32.mrf.mxu3  ;;  %v1481_v15 = vpop.f32.mrf.mxu0 }
 0x1f5   :  { %v1482_v5 = vadd.f32 %v3066_v58, %v1481_v15  ;;  %v1530_v13 = vpop.f32.mrf.mxu1 }
 0x1f6   :  { %v3136_v7 = vadd.f32 %v1626_v21, %v1578_v8 }
 0x1f7   :  { %v1531_v62 = vadd.f32 %v1530_v13, %v1482_v5 }
 0x1fb   :  { %v1579_v63 = vpop.f32.mrf.mxu2 }
 0x1fc   :  { %v1580_v4 = vadd.f32 %v1579_v63, %v1531_v62  ;;  %v1628_v6 = vpop.f32.mrf.mxu3  ;;  %v1484_v20 = vpop.f32.mrf.mxu0 }
 0x1fd   :  { %v1485_v30 = vadd.f32 %v3066_v58, %v1484_v20  ;;  %v1533_v25 = vpop.f32.mrf.mxu1 }
 0x1fe   :  { %v3139_v29 = vadd.f32 %v1628_v6, %v1580_v4 }
 0x1ff   :  { %v1534_v32 = vadd.f32 %v1533_v25, %v1485_v30  ;;  %1679 = vmatmul.bf16.gmra.mxu0 %v3043_v1  ;;  %1728 = vmatmul.bf16.gmra.mxu1 %v3046_v52 }
 0x200   :  { %1777 = vmatmul.bf16.gmra.mxu2 %v3054_v3 }
 0x201   :  { %1826 = vmatmul.bf16.gmra.mxu3 %v3057_v12 }
 0x203   :  { %v1582_v54 = vpop.f32.mrf.mxu2 }
 0x204   :  { %v1583_v43 = vadd.f32 %v1582_v54, %v1534_v32  ;;  %v1631_v38 = vpop.f32.mrf.mxu3  ;;  %v1486_v17 = vpop.f32.mrf.mxu0 }
 0x205   :  { %v1487_v18 = vadd.f32 %v3066_v58, %v1486_v17  ;;  %v1535_v22 = vpop.f32.mrf.mxu1 }
 0x206   :  { %v3146_v41 = vadd.f32 %v1631_v38, %v1583_v43 }
 0x207   :  { %v1536_v34 = vadd.f32 %v1535_v22, %v1487_v18 }
 0x20b   :  { %v1584_v19 = vpop.f32.mrf.mxu2 }
 0x20c   :  { %v1585_v28 = vadd.f32 %v1584_v19, %v1536_v34  ;;  %v1633_v36 = vpop.f32.mrf.mxu3  ;;  %v1489_v1 = vpop.f32.mrf.mxu0 }
 0x20d   :  { %v1490_v52 = vadd.f32 %v3066_v58, %v1489_v1  ;;  %v1538_v47 = vpop.f32.mrf.mxu1 }
 0x20e   :  { %v3149_v3 = vadd.f32 %v1633_v36, %v1585_v28 }
 0x20f   :  { %v1539_v12 = vadd.f32 %v1538_v47, %v1490_v52  ;;  %1684 = vmatmul.bf16.gmra.mxu0 %v3068_v35  ;;  %1733 = vmatmul.bf16.gmra.mxu1 %v3071_v31 }
 0x210   :  { %1782 = vmatmul.bf16.gmra.mxu2 %v3080_v27 }
 0x211   :  { %1831 = vmatmul.bf16.gmra.mxu3 %v3083_v26 }
 0x213   :  { %v1587_v11 = vpop.f32.mrf.mxu2 }
 0x214   :  { %v1588_v0 = vadd.f32 %v1587_v11, %v1539_v12  ;;  %v1636_v2 = vpop.f32.mrf.mxu3  ;;  %v1491_v23 = vpop.f32.mrf.mxu0 }
 0x215   :  { %v1492_v61 = vadd.f32 %v3066_v58, %v1491_v23  ;;  %v1540_v37 = vpop.f32.mrf.mxu1 }
 0x216   :  { %v3156_v50 = vadd.f32 %v1636_v2, %v1588_v0 }
 0x217   :  { %v1541_v49 = vadd.f32 %v1540_v37, %v1492_v61 }
 0x21b   :  { %v1589_v56 = vpop.f32.mrf.mxu2 }
 0x21c   :  { %v1590_v14 = vadd.f32 %v1589_v56, %v1541_v49  ;;  %v1638_v10 = vpop.f32.mrf.mxu3  ;;  %v1650_v35 = vpop.f32.mrf.mxu0 }
 0x21d   :  { %v1699_v59 = vpop.f32.mrf.mxu1  ;;  %v1651_v27 = vadd.f32 %v1650_v35, %v3086_v16 }
 0x21e   :  { %v3158_v31 = vadd.f32 %v1638_v10, %v1590_v14 }
 0x21f   :  { %v1700_v26 = vadd.f32 %v1699_v59, %v1651_v27 }
 0x223   :  { %v1748_v57 = vpop.f32.mrf.mxu2 }
 0x224   :  { %v1749_v9 = vadd.f32 %v1748_v57, %v1700_v26  ;;  %v1797_v46 = vpop.f32.mrf.mxu3  ;;  %v1652_v60 = vpop.f32.mrf.mxu0 }
 0x225   :  { %v1701_v40 = vpop.f32.mrf.mxu1  ;;  %v1653_v55 = vadd.f32 %v1652_v60, %v3089_v42 }
 0x226   :  { %v1798_v58 = vadd.f32 %v1797_v46, %v1749_v9 }
 0x227   :  { %v1702_v8 = vadd.f32 %v1701_v40, %v1653_v55 }
 0x228   :  { %1837 = vst [vmem:[#allocation7] sm:$0xff] %v1798_v58 }
 0x22b   :  { %v1750_v21 = vpop.f32.mrf.mxu2 }
 0x22c   :  { %v1751_v15 = vadd.f32 %v1750_v21, %v1702_v8  ;;  %v1799_v5 = vpop.f32.mrf.mxu3  ;;  %v1655_v13 = vpop.f32.mrf.mxu0 }
 0x22d   :  { %v1704_v62 = vpop.f32.mrf.mxu1  ;;  %v1656_v4 = vadd.f32 %v1655_v13, %v3096_v44 }
 0x22e   :  { %v1800_v63 = vadd.f32 %v1799_v5, %v1751_v15 }
 0x22f   :  { %v1705_v16 = vadd.f32 %v1704_v62, %v1656_v4 }
 0x230   :  { %1838 = vst [vmem:[#allocation7 + $0x8] sm:$0xff] %v1800_v63 }
 0x233   :  { %v1753_v6 = vpop.f32.mrf.mxu2 }
 0x234   :  { %v1754_v20 = vadd.f32 %v1753_v6, %v1705_v16  ;;  %v1802_v30 = vpop.f32.mrf.mxu3  ;;  %v1657_v25 = vpop.f32.mrf.mxu0 }
 0x235   :  { %v1706_v32 = vpop.f32.mrf.mxu1  ;;  %v1658_v42 = vadd.f32 %v1657_v25, %v3099_v24 }
 0x236   :  { %v1803_v54 = vadd.f32 %v1802_v30, %v1754_v20 }
 0x237   :  { %v1707_v43 = vadd.f32 %v1706_v32, %v1658_v42 }
 0x238   :  { %1839 = vst [vmem:[#allocation7 + $0x10] sm:$0xff] %v1803_v54 }
 0x23b   :  { %v1755_v38 = vpop.f32.mrf.mxu2 }
 0x23c   :  { %v1756_v17 = vadd.f32 %v1755_v38, %v1707_v43  ;;  %v1804_v18 = vpop.f32.mrf.mxu3  ;;  %v1660_v22 = vpop.f32.mrf.mxu0 }
 0x23d   :  { %v1709_v34 = vpop.f32.mrf.mxu1  ;;  %v1661_v44 = vadd.f32 %v1660_v22, %v3106_v45 }
 0x23e   :  { %v1805_v19 = vadd.f32 %v1804_v18, %v1756_v17 }
 0x23f   :  { %v1710_v28 = vadd.f32 %v1709_v34, %v1661_v44 }
 0x240   :  { %1840 = vst [vmem:[#allocation7 + $0x18] sm:$0xff] %v1805_v19 }
 0x243   :  { %v1758_v36 = vpop.f32.mrf.mxu2 }
 0x244   :  { %v1759_v1 = vadd.f32 %v1758_v36, %v1710_v28  ;;  %v1807_v52 = vpop.f32.mrf.mxu3  ;;  %v1662_v47 = vpop.f32.mrf.mxu0 }
 0x245   :  { %v1711_v12 = vpop.f32.mrf.mxu1  ;;  %v1663_v24 = vadd.f32 %v1662_v47, %v3109_v53 }
 0x246   :  { %v1808_v11 = vadd.f32 %v1807_v52, %v1759_v1 }
 0x247   :  { %v1712_v0 = vadd.f32 %v1711_v12, %v1663_v24 }
 0x248   :  { %1841 = vst [vmem:[#allocation7 + $0x20] sm:$0xff] %v1808_v11 }
 0x24b   :  { %v1760_v2 = vpop.f32.mrf.mxu2 }
 0x24c   :  { %v1761_v23 = vadd.f32 %v1760_v2, %v1712_v0  ;;  %v1809_v61 = vpop.f32.mrf.mxu3  ;;  %v1665_v37 = vpop.f32.mrf.mxu0 }
 0x24d   :  { %v1714_v49 = vpop.f32.mrf.mxu1  ;;  %v1666_v45 = vadd.f32 %v1665_v37, %v3116_v33 }
 0x24e   :  { %v1810_v56 = vadd.f32 %v1809_v61, %v1761_v23 }
 0x24f   :  { %v1715_v14 = vadd.f32 %v1714_v49, %v1666_v45 }
 0x250   :  { %1842 = vst [vmem:[#allocation7 + $0x28] sm:$0xff] %v1810_v56 }
 0x253   :  { %v1763_v10 = vpop.f32.mrf.mxu2 }
 0x254   :  { %v1764_v35 = vadd.f32 %v1763_v10, %v1715_v14  ;;  %v1812_v59 = vpop.f32.mrf.mxu3  ;;  %v1667_v27 = vpop.f32.mrf.mxu0 }
 0x255   :  { %v1716_v26 = vpop.f32.mrf.mxu1  ;;  %v1668_v53 = vadd.f32 %v1667_v27, %v3119_v48 }
 0x256   :  { %v1813_v57 = vadd.f32 %v1812_v59, %v1764_v35 }
 0x257   :  { %v1717_v9 = vadd.f32 %v1716_v26, %v1668_v53 }
 0x258   :  { %1843 = vst [vmem:[#allocation7 + $0x30] sm:$0xff] %v1813_v57 }
 0x25b   :  { %v1765_v46 = vpop.f32.mrf.mxu2 }
 0x25c   :  { %v1766_v60 = vadd.f32 %v1765_v46, %v1717_v9  ;;  %v1814_v40 = vpop.f32.mrf.mxu3  ;;  %v1670_v58 = vpop.f32.mrf.mxu0 }
 0x25d   :  { %v1719_v55 = vpop.f32.mrf.mxu1  ;;  %v1671_v33 = vadd.f32 %v1670_v58, %v3126_v39 }
 0x25e   :  { %v1815_v8 = vadd.f32 %v1814_v40, %v1766_v60 }
 0x25f   :  { %v1720_v21 = vadd.f32 %v1719_v55, %v1671_v33 }
 0x260   :  { %1844 = vst [vmem:[#allocation7 + $0x38] sm:$0xff] %v1815_v8 }
 0x263   :  { %v1768_v15 = vpop.f32.mrf.mxu2 }
 0x264   :  { %v1769_v5 = vadd.f32 %v1768_v15, %v1720_v21  ;;  %v1817_v13 = vpop.f32.mrf.mxu3  ;;  %v1672_v62 = vpop.f32.mrf.mxu0 }
 0x265   :  { %v1721_v63 = vpop.f32.mrf.mxu1  ;;  %v1673_v48 = vadd.f32 %v1672_v62, %v3129_v51 }
 0x266   :  { %v1818_v4 = vadd.f32 %v1817_v13, %v1769_v5 }
 0x267   :  { %v1722_v16 = vadd.f32 %v1721_v63, %v1673_v48 }
 0x268   :  { %1845 = vst [vmem:[#allocation7 + $0x40] sm:$0xff] %v1818_v4 }
 0x26b   :  { %v1770_v6 = vpop.f32.mrf.mxu2 }
 0x26c   :  { %v1771_v20 = vadd.f32 %v1770_v6, %v1722_v16  ;;  %v1819_v30 = vpop.f32.mrf.mxu3  ;;  %v1675_v25 = vpop.f32.mrf.mxu0 }
 0x26d   :  { %v1724_v32 = vpop.f32.mrf.mxu1  ;;  %v1676_v39 = vadd.f32 %v1675_v25, %v3136_v7 }
 0x26e   :  { %v1820_v54 = vadd.f32 %v1819_v30, %v1771_v20 }
 0x26f   :  { %v1725_v42 = vadd.f32 %v1724_v32, %v1676_v39 }
 0x270   :  { %1846 = vst [vmem:[#allocation7 + $0x48] sm:$0xff] %v1820_v54 }
 0x273   :  { %v1773_v43 = vpop.f32.mrf.mxu2 }
 0x274   :  { %v1774_v38 = vadd.f32 %v1773_v43, %v1725_v42  ;;  %v1822_v17 = vpop.f32.mrf.mxu3  ;;  %v1677_v18 = vpop.f32.mrf.mxu0 }
 0x275   :  { %v1726_v22 = vpop.f32.mrf.mxu1  ;;  %v1678_v51 = vadd.f32 %v1677_v18, %v3139_v29 }
 0x276   :  { %v1823_v34 = vadd.f32 %v1822_v17, %v1774_v38 }
 0x277   :  { %v1727_v19 = vadd.f32 %v1726_v22, %v1678_v51 }
 0x278   :  { %1847 = vst [vmem:[#allocation7 + $0x50] sm:$0xff] %v1823_v34 }
 0x27b   :  { %v1775_v44 = vpop.f32.mrf.mxu2 }
 0x27c   :  { %v1776_v28 = vadd.f32 %v1775_v44, %v1727_v19  ;;  %v1824_v36 = vpop.f32.mrf.mxu3  ;;  %v1680_v1 = vpop.f32.mrf.mxu0 }
 0x27d   :  { %v1729_v52 = vpop.f32.mrf.mxu1  ;;  %v1681_v7 = vadd.f32 %v1680_v1, %v3146_v41 }
 0x27e   :  { %v1825_v47 = vadd.f32 %v1824_v36, %v1776_v28 }
 0x27f   :  { %v1730_v12 = vadd.f32 %v1729_v52, %v1681_v7 }
 0x280   :  { %1848 = vst [vmem:[#allocation7 + $0x58] sm:$0xff] %v1825_v47 }
 0x283   :  { %v1778_v11 = vpop.f32.mrf.mxu2 }
 0x284   :  { %v1779_v24 = vadd.f32 %v1778_v11, %v1730_v12  ;;  %v1827_v0 = vpop.f32.mrf.mxu3  ;;  %v1682_v2 = vpop.f32.mrf.mxu0 }
 0x285   :  { %v1731_v23 = vpop.f32.mrf.mxu1  ;;  %v1683_v29 = vadd.f32 %v1682_v2, %v3149_v3 }
 0x286   :  { %v1828_v61 = vadd.f32 %v1827_v0, %v1779_v24 }
 0x287   :  { %v1732_v37 = vadd.f32 %v1731_v23, %v1683_v29 }
 0x288   :  { %1849 = vst [vmem:[#allocation7 + $0x60] sm:$0xff] %v1828_v61 }
 0x28b   :  { %v1780_v49 = vpop.f32.mrf.mxu2 }
 0x28c   :  { %v1781_v56 = vadd.f32 %v1780_v49, %v1732_v37  ;;  %v1829_v45 = vpop.f32.mrf.mxu3  ;;  %v1685_v14 = vpop.f32.mrf.mxu0 }
 0x28d   :  { %v1686_v35 = vadd.f32 %v1685_v14, %v3156_v50  ;;  %v1734_v41 = vpop.f32.mrf.mxu1 }
 0x28e   :  { %v1830_v10 = vadd.f32 %v1829_v45, %v1781_v56 }
 0x28f   :  { %v1735_v59 = vadd.f32 %v1734_v41, %v1686_v35 }
 0x290   :  { %1850 = vst [vmem:[#allocation7 + $0x68] sm:$0xff] %v1830_v10 }
 0x293   :  { %v1783_v27 = vpop.f32.mrf.mxu2 }
 0x294   :  { %v1784_v26 = vadd.f32 %v1783_v27, %v1735_v59  ;;  %v1832_v57 = vpop.f32.mrf.mxu3  ;;  %v1687_v53 = vpop.f32.mrf.mxu0 }
 0x295   :  { %v1688_v46 = vadd.f32 %v1687_v53, %v3158_v31  ;;  %v1736_v3 = vpop.f32.mrf.mxu1 }
 0x296   :  { %v1833_v9 = vadd.f32 %v1832_v57, %v1784_v26 }
 0x297   :  { %v1737_v60 = vadd.f32 %v1736_v3, %v1688_v46 }
 0x298   :  { %1851 = vst [vmem:[#allocation7 + $0x70] sm:$0xff] %v1833_v9 }
 0x29b   :  { %v1785_v50 = vpop.f32.mrf.mxu2 }
 0x29c   :  { %v1786_v40 = vadd.f32 %v1785_v50, %v1737_v60  ;;  %v1834_v58 = vpop.f32.mrf.mxu3 }
 0x29e   :  { %v1835_v55 = vadd.f32 %v1834_v58, %v1786_v40 }
 0x2a0   :  { %1852 = vst [vmem:[#allocation7 + $0x78] sm:$0xff] %v1835_v55 }
 0x2a1   :  { %1865 = dma.vmem_to_hbm [thread:$0]  %s1858_s23, 2048, %s1860_s26, [#allocation4], %s2552_s27, %s2552_s27, %s2553_s28  }
 0x2a2   :  { %2543 = dma.done.wait [#allocation4], 2048  }
 0x2a3   :  { %2544 = vsyncadd [#allocation4], 4294965248 }
 0x2a4   :  { %1870 = vsyncpa [#allocation3], 1 }
 0x2a5   :  { %1871 = vsyncpa [#allocation6], 1 }
 0x2a6   :  { %1872 = vsyncpa [#allocation4], 1 }

</bundles_post_ra>
